<compile_context>
chip_gen: v7x
topology: tpu7x:2x2x1
jax: 0.10.0
libtpu: 0.0.40
codegen_flags: <defaults>
</compile_context>

<pallas_src>
import jax
import jax.numpy as jnp
import numpy as np
from jax import lax
from jax.experimental import pallas as pl
from jax.experimental.pallas import tpu as pltpu

LANES = 128


# ----------------------------- Pallas kernels -------------------------------

def _conv_relu_pool_kernel(p_ref, w_ref, b_ref, o_ref):
    """Fused im2col-matmul + bias + ReLU + 2x2 max-pool for one batch element.

    p_ref : [4, 1, Mp, Kp] bf16 patches; leading axis = 4 positions of each
            2x2 pool window, Mp = pooled OH*OW, Kp = Cin*KH*KW padded to 128k.
    w_ref : [Kp, 128]      bf16 weights (out-channels zero-padded to 128).
    b_ref : [1, 128]       f32 bias (zero-padded).
    o_ref : [1, Mp, 128]   bf16 pooled activations (lane-dense store).
    """
    w = w_ref[...]
    bias = b_ref[...]

    def window(q):
        acc = jnp.dot(p_ref[q, 0], w, preferred_element_type=jnp.float32)
        return jnp.maximum(acc + bias, 0.0)       # bias + ReLU in f32 (VPU)

    pooled = jnp.maximum(jnp.maximum(window(0), window(1)),
                         jnp.maximum(window(2), window(3)))
    o_ref[0] = pooled.astype(o_ref.dtype)


def conv_relu_pool(patches, w, b):
    """patches:[4,B,Mp,Kp] bf16, w:[Kp,128] bf16, b:[1,128] f32 -> [B,Mp,128]."""
    _, B, Mp, Kp = patches.shape
    return pl.pallas_call(
        _conv_relu_pool_kernel,
        out_shape=jax.ShapeDtypeStruct((B, Mp, LANES), jnp.bfloat16),
        grid=(B,),
        in_specs=[
            pl.BlockSpec((4, 1, Mp, Kp), lambda i: (0, i, 0, 0)),
            pl.BlockSpec((Kp, LANES), lambda i: (0, 0)),
            pl.BlockSpec((1, LANES), lambda i: (0, 0)),
        ],
        out_specs=pl.BlockSpec((1, Mp, LANES), lambda i: (i, 0, 0)),
        compiler_params=pltpu.CompilerParams(
            dimension_semantics=("parallel",)),
    )(patches, w, b)


def _fc_chain_kernel(x_ref, w1_ref, b1_ref, w2_ref, b2_ref, w3_ref, b3_ref,
                     o_ref):
    """fc1+ReLU -> fc2+ReLU -> fc3, all widths padded to 128, fused."""
    h = jnp.dot(x_ref[...], w1_ref[...], preferred_element_type=jnp.float32)
    h = jnp.maximum(h + b1_ref[...], 0.0)
    h = jnp.dot(h.astype(jnp.bfloat16), w2_ref[...],
                preferred_element_type=jnp.float32)
    h = jnp.maximum(h + b2_ref[...], 0.0)
    h = jnp.dot(h.astype(jnp.bfloat16), w3_ref[...],
                preferred_element_type=jnp.float32)
    o_ref[...] = (h + b3_ref[...]).astype(o_ref.dtype)


def fc_chain(x, w1, b1, w2, b2, w3, b3):
    """x:[B,K] bf16 -> [B,128] f32 (caller slices the first 10 columns)."""
    B, K = x.shape
    bm = min(B, 128)
    return pl.pallas_call(
        _fc_chain_kernel,
        out_shape=jax.ShapeDtypeStruct((B, LANES), jnp.float32),
        grid=(pl.cdiv(B, bm),),
        in_specs=[
            pl.BlockSpec((bm, K), lambda i: (i, 0)),
            pl.BlockSpec((K, LANES), lambda i: (0, 0)),
            pl.BlockSpec((1, LANES), lambda i: (0, 0)),
            pl.BlockSpec((LANES, LANES), lambda i: (0, 0)),
            pl.BlockSpec((1, LANES), lambda i: (0, 0)),
            pl.BlockSpec((LANES, LANES), lambda i: (0, 0)),
            pl.BlockSpec((1, LANES), lambda i: (0, 0)),
        ],
        out_specs=pl.BlockSpec((bm, LANES), lambda i: (i, 0)),
        compiler_params=pltpu.CompilerParams(
            dimension_semantics=("parallel",)),
    )(x, w1, b1, w2, b2, w3, b3)


# ----------------------- im2col glue (wrapper-side JAX) ----------------------

def _pool_major_patches(x, kh, kw, kp):
    """x:[B,Cin,H,W] -> bf16 [4, B, (OH//2)*(OW//2), kp] patches.

    Leading axis enumerates the 4 positions of each 2x2 pool window so the
    conv kernel can pool with a pure element-wise max.  K axis is ordered
    (cin, kh, kw) to match w.reshape(Cout, -1), zero-padded to `kp`.
    """
    B, cin, H, W = x.shape
    oh, ow = H - kh + 1, W - kw + 1
    ohp, owp = oh // 2, ow // 2
    k = cin * kh * kw
    cols = [x[:, :, i:i + oh, j:j + ow] for i in range(kh) for j in range(kw)]
    p = jnp.stack(cols, axis=-1)                       # [B,Cin,OH,OW,kh*kw]
    p = p.transpose(0, 2, 3, 1, 4).reshape(B, oh, ow, k)
    p = p.reshape(B, ohp, 2, owp, 2, k)
    p = p.transpose(2, 4, 0, 1, 3, 5).reshape(4, B, ohp * owp, k)
    if kp > k:
        p = jnp.pad(p, ((0, 0), (0, 0), (0, 0), (0, kp - k)))
    return p.astype(jnp.bfloat16)


# ------------------------------- parameters ---------------------------------

def init_params(key):
    # Deterministic init mimicking PyTorch's default U(-1/sqrt(fan_in), +).
    def uniform(k, shape, fan_in):
        bound = 1.0 / np.sqrt(fan_in)
        return jax.random.uniform(k, shape, jnp.float32, -bound, bound)

    ks = jax.random.split(key, 10)
    return {
        "conv1_w": uniform(ks[0], (6, 3, 5, 5), 3 * 25),
        "conv1_b": uniform(ks[1], (6,), 3 * 25),
        "conv2_w": uniform(ks[2], (16, 6, 5, 5), 6 * 25),
        "conv2_b": uniform(ks[3], (16,), 6 * 25),
        "fc1_w": uniform(ks[4], (120, 400), 400),
        "fc1_b": uniform(ks[5], (120,), 400),
        "fc2_w": uniform(ks[6], (84, 120), 120),
        "fc2_b": uniform(ks[7], (84,), 120),
        "fc3_w": uniform(ks[8], (10, 84), 84),
        "fc3_b": uniform(ks[9], (10,), 84),
    }


def prepare_params(p):
    """One-time prep: transpose to [K, N], zero-pad to 128 multiples, cast the
    matmul weights to bf16 (MXU inputs).  Biases stay f32 as [1, 128] rows."""
    def pad2(a, rows, cols):
        r, c = a.shape
        return jnp.pad(a, ((0, rows - r), (0, cols - c)))

    def conv_w(w, kp):
        cout = w.shape[0]
        w2 = w.reshape(cout, -1).T                     # [K, Cout], (cin,kh,kw)
        return pad2(w2, kp, LANES).astype(jnp.bfloat16)

    def bias(b):
        return jnp.pad(b, (0, LANES - b.shape[0])).reshape(1, LANES).astype(jnp.float32)

    return {
        "c1_w": conv_w(p["conv1_w"], 128), "c1_b": bias(p["conv1_b"]),
        "c2_w": conv_w(p["conv2_w"], 256), "c2_b": bias(p["conv2_b"]),
        "f1_w": pad2(p["fc1_w"].T, 400, LANES).astype(jnp.bfloat16),
        "f1_b": bias(p["fc1_b"]),
        "f2_w": pad2(p["fc2_w"].T, LANES, LANES).astype(jnp.bfloat16),
        "f2_b": bias(p["fc2_b"]),
        "f3_w": pad2(p["fc3_w"].T, LANES, LANES).astype(jnp.bfloat16),
        "f3_b": bias(p["fc3_b"]),
    }


# -------------------------------- forward -----------------------------------

def net_forward(prep, x):
    B, _, H, W = x.shape
    # Stage 1: conv1(3->6, 5x5) + ReLU + 2x2 max-pool (fused kernel).
    p1 = _pool_major_patches(x, 5, 5, 128)               # [4,B,196,128] bf16
    a1 = conv_relu_pool(p1, prep["c1_w"], prep["c1_b"])  # [B,196,128]   bf16
    oh1, ow1 = (H - 4) // 2, (W - 4) // 2
    a1 = a1[:, :, :6].transpose(0, 2, 1).reshape(B, 6, oh1, ow1)   # NCHW

    # Stage 2: conv2(6->16, 5x5) + ReLU + 2x2 max-pool (fused kernel).
    p2 = _pool_major_patches(a1, 5, 5, 256)              # [4,B,25,256]  bf16
    a2 = conv_relu_pool(p2, prep["c2_w"], prep["c2_b"])  # [B,25,128]    bf16

    # Flatten in NCHW order (== torch .view(-1, 16*5*5)).
    feat = a2[:, :, :16].transpose(0, 2, 1).reshape(B, 16 * 5 * 5)

    # Stage 3: fc1+ReLU -> fc2+ReLU -> fc3 in ONE fused kernel (padded N=128).
    logits = fc_chain(feat, prep["f1_w"], prep["f1_b"],
                      prep["f2_w"], prep["f2_b"],
                      prep["f3_w"], prep["f3_b"])        # [B,128] f32
    return logits[:, :10]


def net_reference(p, x):
    # Pure-JAX f32 reference (HIGHEST precision) for correctness checking.
    hp = lax.Precision.HIGHEST

    def conv(x, w, b):
        y = lax.conv_general_dilated(
            x, w, (1, 1), "VALID",
            dimension_numbers=("NCHW", "OIHW", "NCHW"), precision=hp)
        return jax.nn.relu(y + b[None, :, None, None])

    def pool(x):
        return lax.reduce_window(x, -jnp.inf, lax.max,
                                 (1, 1, 2, 2), (1, 1, 2, 2), "VALID")

    x = pool(conv(x, p["conv1_w"], p["conv1_b"]))
    x = pool(conv(x, p["conv2_w"], p["conv2_b"]))
    x = x.reshape(-1, 400)
    x = jax.nn.relu(jnp.dot(x, p["fc1_w"].T, precision=hp) + p["fc1_b"])
    x = jax.nn.relu(jnp.dot(x, p["fc2_w"].T, precision=hp) + p["fc2_b"])
    return jnp.dot(x, p["fc3_w"].T, precision=hp) + p["fc3_b"]


if __name__ == "__main__":
    key = jax.random.PRNGKey(0)
    k_param, k_x = jax.random.split(key)
    params = init_params(k_param)
    prep = prepare_params(params)          # one-time transpose/pad/bf16 cast
    # Net requires 32x32 spatial input so the 16*5*5 flatten is consistent.
    x = jax.random.normal(k_x, (2, 3, 32, 32), jnp.float32)

    out = jax.jit(net_forward)(prep, x)
    out = jax.block_until_ready(out)
    assert out.shape == (2, 10), out.shape

    ref = jax.block_until_ready(net_reference(params, x))
    # Tolerance loosened because the kernels feed bf16 operands to the MXU
    # (accumulation stays f32); observed error is well inside this bound.
    np.testing.assert_allclose(np.asarray(out, dtype=np.float32),
                               np.asarray(ref), rtol=5e-2, atol=5e-2)
    print("KERNEL_OK")
</pallas_src>

<mosaic_0001>
module attributes {stable_mosaic.version = 11 : i64} {
  func.func @_conv_relu_pool_kernel(%arg0: i32, %arg1: memref<4x1x196x128xbf16, #tpu.memory_space<vmem>>, %arg2: memref<128x128xbf16, #tpu.memory_space<vmem>>, %arg3: memref<1x128xf32, #tpu.memory_space<vmem>>, %arg4: memref<1x196x128xbf16, #tpu.memory_space<vmem>>) attributes {dimension_semantics = [#tpu.dimension_semantics<parallel>], iteration_bounds = array<i64: 2>, scalar_prefetch = 0 : i64, scratch_operands = 0 : i64, tpu.core_type = #tpu.core_type<tc>, window_params = [{transform_indices = @transform_0, window_bounds = array<i64: 4, 1, 196, 128>}, {pipeline_mode = #tpu.pipeline_mode<synchronous>, transform_indices = @transform_1, window_bounds = array<i64: 128, 128>}, {pipeline_mode = #tpu.pipeline_mode<synchronous>, transform_indices = @transform_2, window_bounds = array<i64: 1, 128>}, {transform_indices = @transform_3, window_bounds = array<i64: 1, 196, 128>}]} {
    %c0 = arith.constant 0 : index
    %c0_0 = arith.constant 0 : index
    %0 = vector.load %arg2[%c0, %c0_0] : memref<128x128xbf16, #tpu.memory_space<vmem>>, vector<128x128xbf16>
    %c0_1 = arith.constant 0 : index
    %c0_2 = arith.constant 0 : index
    %1 = vector.load %arg3[%c0_1, %c0_2] : memref<1x128xf32, #tpu.memory_space<vmem>>, vector<1x128xf32>
    %c0_3 = arith.constant 0 : index
    %c0_4 = arith.constant 0 : index
    %c0_5 = arith.constant 0 : index
    %c0_6 = arith.constant 0 : index
    %2 = vector.load %arg1[%c0_3, %c0_4, %c0_5, %c0_6] : memref<4x1x196x128xbf16, #tpu.memory_space<vmem>>, vector<1x1x196x128xbf16>
    %3 = vector.shape_cast %2 : vector<1x1x196x128xbf16> to vector<196x128xbf16>
    %cst = arith.constant dense<0.000000e+00> : vector<196x128xf32>
    %4 = tpu.matmul %3, %0, %cst {dimension_numbers = #tpu.dot_dimension_numbers<[1], [0], [0], [1], [0, 0, 1, 1], [], []>} : vector<196x128xbf16>, vector<128x128xbf16>, vector<196x128xf32> -> vector<196x128xf32>
    %5 = vector.broadcast %1 : vector<1x128xf32> to vector<196x128xf32>
    %6 = arith.addf %4, %5 : vector<196x128xf32>
    %cst_7 = arith.constant 0.000000e+00 : f32
    %7 = vector.broadcast %cst_7 : f32 to vector<196x128xf32>
    %8 = arith.maximumf %6, %7 : vector<196x128xf32>
    %c1 = arith.constant 1 : index
    %c0_8 = arith.constant 0 : index
    %c0_9 = arith.constant 0 : index
    %c0_10 = arith.constant 0 : index
    %9 = vector.load %arg1[%c1, %c0_8, %c0_9, %c0_10] : memref<4x1x196x128xbf16, #tpu.memory_space<vmem>>, vector<1x1x196x128xbf16>
    %10 = vector.shape_cast %9 : vector<1x1x196x128xbf16> to vector<196x128xbf16>
    %cst_11 = arith.constant dense<0.000000e+00> : vector<196x128xf32>
    %11 = tpu.matmul %10, %0, %cst_11 {dimension_numbers = #tpu.dot_dimension_numbers<[1], [0], [0], [1], [0, 0, 1, 1], [], []>} : vector<196x128xbf16>, vector<128x128xbf16>, vector<196x128xf32> -> vector<196x128xf32>
    %12 = vector.broadcast %1 : vector<1x128xf32> to vector<196x128xf32>
    %13 = arith.addf %11, %12 : vector<196x128xf32>
    %cst_12 = arith.constant 0.000000e+00 : f32
    %14 = vector.broadcast %cst_12 : f32 to vector<196x128xf32>
    %15 = arith.maximumf %13, %14 : vector<196x128xf32>
    %16 = arith.maximumf %8, %15 : vector<196x128xf32>
    %c2 = arith.constant 2 : index
    %c0_13 = arith.constant 0 : index
    %c0_14 = arith.constant 0 : index
    %c0_15 = arith.constant 0 : index
    %17 = vector.load %arg1[%c2, %c0_13, %c0_14, %c0_15] : memref<4x1x196x128xbf16, #tpu.memory_space<vmem>>, vector<1x1x196x128xbf16>
    %18 = vector.shape_cast %17 : vector<1x1x196x128xbf16> to vector<196x128xbf16>
    %cst_16 = arith.constant dense<0.000000e+00> : vector<196x128xf32>
    %19 = tpu.matmul %18, %0, %cst_16 {dimension_numbers = #tpu.dot_dimension_numbers<[1], [0], [0], [1], [0, 0, 1, 1], [], []>} : vector<196x128xbf16>, vector<128x128xbf16>, vector<196x128xf32> -> vector<196x128xf32>
    %20 = vector.broadcast %1 : vector<1x128xf32> to vector<196x128xf32>
    %21 = arith.addf %19, %20 : vector<196x128xf32>
    %cst_17 = arith.constant 0.000000e+00 : f32
    %22 = vector.broadcast %cst_17 : f32 to vector<196x128xf32>
    %23 = arith.maximumf %21, %22 : vector<196x128xf32>
    %c3 = arith.constant 3 : index
    %c0_18 = arith.constant 0 : index
    %c0_19 = arith.constant 0 : index
    %c0_20 = arith.constant 0 : index
    %24 = vector.load %arg1[%c3, %c0_18, %c0_19, %c0_20] : memref<4x1x196x128xbf16, #tpu.memory_space<vmem>>, vector<1x1x196x128xbf16>
    %25 = vector.shape_cast %24 : vector<1x1x196x128xbf16> to vector<196x128xbf16>
    %cst_21 = arith.constant dense<0.000000e+00> : vector<196x128xf32>
    %26 = tpu.matmul %25, %0, %cst_21 {dimension_numbers = #tpu.dot_dimension_numbers<[1], [0], [0], [1], [0, 0, 1, 1], [], []>} : vector<196x128xbf16>, vector<128x128xbf16>, vector<196x128xf32> -> vector<196x128xf32>
    %27 = vector.broadcast %1 : vector<1x128xf32> to vector<196x128xf32>
    %28 = arith.addf %26, %27 : vector<196x128xf32>
    %cst_22 = arith.constant 0.000000e+00 : f32
    %29 = vector.broadcast %cst_22 : f32 to vector<196x128xf32>
    %30 = arith.maximumf %28, %29 : vector<196x128xf32>
    %31 = arith.maximumf %23, %30 : vector<196x128xf32>
    %32 = arith.maximumf %16, %31 : vector<196x128xf32>
    %33 = arith.truncf %32 : vector<196x128xf32> to vector<196x128xbf16>
    %c0_23 = arith.constant 0 : index
    %c0_24 = arith.constant 0 : index
    %c0_25 = arith.constant 0 : index
    %34 = vector.load %arg4[%c0_23, %c0_24, %c0_25] : memref<1x196x128xbf16, #tpu.memory_space<vmem>>, vector<1x196x128xbf16>
    %35 = vector.shape_cast %34 : vector<1x196x128xbf16> to vector<196x128xbf16>
    %36 = vector.shape_cast %33 : vector<196x128xbf16> to vector<1x196x128xbf16>
    tpu.vector_store %arg4[%c0_23, %c0_24, %c0_25], %36 {strides = array<i32>} : memref<1x196x128xbf16, #tpu.memory_space<vmem>>, vector<1x196x128xbf16>,
    return
  }
  func.func @transform_0(%arg0: i32) -> (i32, i32, i32, i32) {
    %c0_i32 = arith.constant 0 : i32
    %c0_i32_0 = arith.constant 0 : i32
    %c0_i32_1 = arith.constant 0 : i32
    %c0_i32_2 = arith.constant 0 : i32
    return %c0_i32, %arg0, %c0_i32_0, %c0_i32_1 : i32, i32, i32, i32
  }
  func.func @transform_1(%arg0: i32) -> (i32, i32) {
    %c0_i32 = arith.constant 0 : i32
    %c0_i32_0 = arith.constant 0 : i32
    %c0_i32_1 = arith.constant 0 : i32
    return %c0_i32, %c0_i32_0 : i32, i32
  }
  func.func @transform_2(%arg0: i32) -> (i32, i32) {
    %c0_i32 = arith.constant 0 : i32
    %c0_i32_0 = arith.constant 0 : i32
    %c0_i32_1 = arith.constant 0 : i32
    return %c0_i32, %c0_i32_0 : i32, i32
  }
  func.func @transform_3(%arg0: i32) -> (i32, i32, i32) {
    %c0_i32 = arith.constant 0 : i32
    %c0_i32_0 = arith.constant 0 : i32
    %c0_i32_1 = arith.constant 0 : i32
    return %arg0, %c0_i32, %c0_i32_0 : i32, i32, i32
  }
}

module attributes {stable_mosaic.version = 11 : i64} {
  func.func @_conv_relu_pool_kernel(%arg0: i32, %arg1: memref<4x1x25x256xbf16, #tpu.memory_space<vmem>>, %arg2: memref<256x128xbf16, #tpu.memory_space<vmem>>, %arg3: memref<1x128xf32, #tpu.memory_space<vmem>>, %arg4: memref<1x25x128xbf16, #tpu.memory_space<vmem>>) attributes {dimension_semantics = [#tpu.dimension_semantics<parallel>], iteration_bounds = array<i64: 2>, scalar_prefetch = 0 : i64, scratch_operands = 0 : i64, tpu.core_type = #tpu.core_type<tc>, window_params = [{transform_indices = @transform_0, window_bounds = array<i64: 4, 1, 25, 256>}, {pipeline_mode = #tpu.pipeline_mode<synchronous>, transform_indices = @transform_1, window_bounds = array<i64: 256, 128>}, {pipeline_mode = #tpu.pipeline_mode<synchronous>, transform_indices = @transform_2, window_bounds = array<i64: 1, 128>}, {transform_indices = @transform_3, window_bounds = array<i64: 1, 25, 128>}]} {
    %c0 = arith.constant 0 : index
    %c0_0 = arith.constant 0 : index
    %0 = vector.load %arg2[%c0, %c0_0] : memref<256x128xbf16, #tpu.memory_space<vmem>>, vector<256x128xbf16>
    %c0_1 = arith.constant 0 : index
    %c0_2 = arith.constant 0 : index
    %1 = vector.load %arg3[%c0_1, %c0_2] : memref<1x128xf32, #tpu.memory_space<vmem>>, vector<1x128xf32>
    %c0_3 = arith.constant 0 : index
    %c0_4 = arith.constant 0 : index
    %c0_5 = arith.constant 0 : index
    %c0_6 = arith.constant 0 : index
    %2 = vector.load %arg1[%c0_3, %c0_4, %c0_5, %c0_6] : memref<4x1x25x256xbf16, #tpu.memory_space<vmem>>, vector<1x1x25x256xbf16>
    %3 = vector.shape_cast %2 : vector<1x1x25x256xbf16> to vector<25x256xbf16>
    %cst = arith.constant dense<0.000000e+00> : vector<25x128xf32>
    %4 = tpu.matmul %3, %0, %cst {dimension_numbers = #tpu.dot_dimension_numbers<[1], [0], [0], [1], [0, 0, 1, 1], [], []>} : vector<25x256xbf16>, vector<256x128xbf16>, vector<25x128xf32> -> vector<25x128xf32>
    %5 = vector.broadcast %1 : vector<1x128xf32> to vector<25x128xf32>
    %6 = arith.addf %4, %5 : vector<25x128xf32>
    %cst_7 = arith.constant 0.000000e+00 : f32
    %7 = vector.broadcast %cst_7 : f32 to vector<25x128xf32>
    %8 = arith.maximumf %6, %7 : vector<25x128xf32>
    %c1 = arith.constant 1 : index
    %c0_8 = arith.constant 0 : index
    %c0_9 = arith.constant 0 : index
    %c0_10 = arith.constant 0 : index
    %9 = vector.load %arg1[%c1, %c0_8, %c0_9, %c0_10] : memref<4x1x25x256xbf16, #tpu.memory_space<vmem>>, vector<1x1x25x256xbf16>
    %10 = vector.shape_cast %9 : vector<1x1x25x256xbf16> to vector<25x256xbf16>
    %cst_11 = arith.constant dense<0.000000e+00> : vector<25x128xf32>
    %11 = tpu.matmul %10, %0, %cst_11 {dimension_numbers = #tpu.dot_dimension_numbers<[1], [0], [0], [1], [0, 0, 1, 1], [], []>} : vector<25x256xbf16>, vector<256x128xbf16>, vector<25x128xf32> -> vector<25x128xf32>
    %12 = vector.broadcast %1 : vector<1x128xf32> to vector<25x128xf32>
    %13 = arith.addf %11, %12 : vector<25x128xf32>
    %cst_12 = arith.constant 0.000000e+00 : f32
    %14 = vector.broadcast %cst_12 : f32 to vector<25x128xf32>
    %15 = arith.maximumf %13, %14 : vector<25x128xf32>
    %16 = arith.maximumf %8, %15 : vector<25x128xf32>
    %c2 = arith.constant 2 : index
    %c0_13 = arith.constant 0 : index
    %c0_14 = arith.constant 0 : index
    %c0_15 = arith.constant 0 : index
    %17 = vector.load %arg1[%c2, %c0_13, %c0_14, %c0_15] : memref<4x1x25x256xbf16, #tpu.memory_space<vmem>>, vector<1x1x25x256xbf16>
    %18 = vector.shape_cast %17 : vector<1x1x25x256xbf16> to vector<25x256xbf16>
    %cst_16 = arith.constant dense<0.000000e+00> : vector<25x128xf32>
    %19 = tpu.matmul %18, %0, %cst_16 {dimension_numbers = #tpu.dot_dimension_numbers<[1], [0], [0], [1], [0, 0, 1, 1], [], []>} : vector<25x256xbf16>, vector<256x128xbf16>, vector<25x128xf32> -> vector<25x128xf32>
    %20 = vector.broadcast %1 : vector<1x128xf32> to vector<25x128xf32>
    %21 = arith.addf %19, %20 : vector<25x128xf32>
    %cst_17 = arith.constant 0.000000e+00 : f32
    %22 = vector.broadcast %cst_17 : f32 to vector<25x128xf32>
    %23 = arith.maximumf %21, %22 : vector<25x128xf32>
    %c3 = arith.constant 3 : index
    %c0_18 = arith.constant 0 : index
    %c0_19 = arith.constant 0 : index
    %c0_20 = arith.constant 0 : index
    %24 = vector.load %arg1[%c3, %c0_18, %c0_19, %c0_20] : memref<4x1x25x256xbf16, #tpu.memory_space<vmem>>, vector<1x1x25x256xbf16>
    %25 = vector.shape_cast %24 : vector<1x1x25x256xbf16> to vector<25x256xbf16>
    %cst_21 = arith.constant dense<0.000000e+00> : vector<25x128xf32>
    %26 = tpu.matmul %25, %0, %cst_21 {dimension_numbers = #tpu.dot_dimension_numbers<[1], [0], [0], [1], [0, 0, 1, 1], [], []>} : vector<25x256xbf16>, vector<256x128xbf16>, vector<25x128xf32> -> vector<25x128xf32>
    %27 = vector.broadcast %1 : vector<1x128xf32> to vector<25x128xf32>
    %28 = arith.addf %26, %27 : vector<25x128xf32>
    %cst_22 = arith.constant 0.000000e+00 : f32
    %29 = vector.broadcast %cst_22 : f32 to vector<25x128xf32>
    %30 = arith.maximumf %28, %29 : vector<25x128xf32>
    %31 = arith.maximumf %23, %30 : vector<25x128xf32>
    %32 = arith.maximumf %16, %31 : vector<25x128xf32>
    %33 = arith.truncf %32 : vector<25x128xf32> to vector<25x128xbf16>
    %c0_23 = arith.constant 0 : index
    %c0_24 = arith.constant 0 : index
    %c0_25 = arith.constant 0 : index
    %34 = vector.load %arg4[%c0_23, %c0_24, %c0_25] : memref<1x25x128xbf16, #tpu.memory_space<vmem>>, vector<1x25x128xbf16>
    %35 = vector.shape_cast %34 : vector<1x25x128xbf16> to vector<25x128xbf16>
    %36 = vector.shape_cast %33 : vector<25x128xbf16> to vector<1x25x128xbf16>
    tpu.vector_store %arg4[%c0_23, %c0_24, %c0_25], %36 {strides = array<i32>} : memref<1x25x128xbf16, #tpu.memory_space<vmem>>, vector<1x25x128xbf16>,
    return
  }
  func.func @transform_0(%arg0: i32) -> (i32, i32, i32, i32) {
    %c0_i32 = arith.constant 0 : i32
    %c0_i32_0 = arith.constant 0 : i32
    %c0_i32_1 = arith.constant 0 : i32
    %c0_i32_2 = arith.constant 0 : i32
    return %c0_i32, %arg0, %c0_i32_0, %c0_i32_1 : i32, i32, i32, i32
  }
  func.func @transform_1(%arg0: i32) -> (i32, i32) {
    %c0_i32 = arith.constant 0 : i32
    %c0_i32_0 = arith.constant 0 : i32
    %c0_i32_1 = arith.constant 0 : i32
    return %c0_i32, %c0_i32_0 : i32, i32
  }
  func.func @transform_2(%arg0: i32) -> (i32, i32) {
    %c0_i32 = arith.constant 0 : i32
    %c0_i32_0 = arith.constant 0 : i32
    %c0_i32_1 = arith.constant 0 : i32
    return %c0_i32, %c0_i32_0 : i32, i32
  }
  func.func @transform_3(%arg0: i32) -> (i32, i32, i32) {
    %c0_i32 = arith.constant 0 : i32
    %c0_i32_0 = arith.constant 0 : i32
    %c0_i32_1 = arith.constant 0 : i32
    return %arg0, %c0_i32, %c0_i32_0 : i32, i32, i32
  }
}

module attributes {stable_mosaic.version = 11 : i64} {
  func.func @_fc_chain_kernel(%arg0: i32, %arg1: memref<2x400xbf16, #tpu.memory_space<vmem>>, %arg2: memref<400x128xbf16, #tpu.memory_space<vmem>>, %arg3: memref<1x128xf32, #tpu.memory_space<vmem>>, %arg4: memref<128x128xbf16, #tpu.memory_space<vmem>>, %arg5: memref<1x128xf32, #tpu.memory_space<vmem>>, %arg6: memref<128x128xbf16, #tpu.memory_space<vmem>>, %arg7: memref<1x128xf32, #tpu.memory_space<vmem>>, %arg8: memref<2x128xf32, #tpu.memory_space<vmem>>) attributes {dimension_semantics = [#tpu.dimension_semantics<parallel>], iteration_bounds = array<i64: 1>, scalar_prefetch = 0 : i64, scratch_operands = 0 : i64, tpu.core_type = #tpu.core_type<tc>, window_params = [{transform_indices = @transform_0, window_bounds = array<i64: 2, 400>}, {pipeline_mode = #tpu.pipeline_mode<synchronous>, transform_indices = @transform_1, window_bounds = array<i64: 400, 128>}, {pipeline_mode = #tpu.pipeline_mode<synchronous>, transform_indices = @transform_2, window_bounds = array<i64: 1, 128>}, {pipeline_mode = #tpu.pipeline_mode<synchronous>, transform_indices = @transform_3, window_bounds = array<i64: 128, 128>}, {pipeline_mode = #tpu.pipeline_mode<synchronous>, transform_indices = @transform_4, window_bounds = array<i64: 1, 128>}, {pipeline_mode = #tpu.pipeline_mode<synchronous>, transform_indices = @transform_5, window_bounds = array<i64: 128, 128>}, {pipeline_mode = #tpu.pipeline_mode<synchronous>, transform_indices = @transform_6, window_bounds = array<i64: 1, 128>}, {transform_indices = @transform_7, window_bounds = array<i64: 2, 128>}]} {
    %c0 = arith.constant 0 : index
    %c0_0 = arith.constant 0 : index
    %0 = vector.load %arg1[%c0, %c0_0] : memref<2x400xbf16, #tpu.memory_space<vmem>>, vector<2x400xbf16>
    %c0_1 = arith.constant 0 : index
    %c0_2 = arith.constant 0 : index
    %1 = vector.load %arg2[%c0_1, %c0_2] : memref<400x128xbf16, #tpu.memory_space<vmem>>, vector<400x128xbf16>
    %cst = arith.constant dense<0.000000e+00> : vector<2x128xf32>
    %2 = tpu.matmul %0, %1, %cst {dimension_numbers = #tpu.dot_dimension_numbers<[1], [0], [0], [1], [0, 0, 1, 1], [], []>} : vector<2x400xbf16>, vector<400x128xbf16>, vector<2x128xf32> -> vector<2x128xf32>
    %c0_3 = arith.constant 0 : index
    %c0_4 = arith.constant 0 : index
    %3 = vector.load %arg3[%c0_3, %c0_4] : memref<1x128xf32, #tpu.memory_space<vmem>>, vector<1x128xf32>
    %4 = vector.broadcast %3 : vector<1x128xf32> to vector<2x128xf32>
    %5 = arith.addf %2, %4 : vector<2x128xf32>
    %cst_5 = arith.constant 0.000000e+00 : f32
    %6 = vector.broadcast %cst_5 : f32 to vector<2x128xf32>
    %7 = arith.maximumf %5, %6 : vector<2x128xf32>
    %8 = arith.truncf %7 : vector<2x128xf32> to vector<2x128xbf16>
    %c0_6 = arith.constant 0 : index
    %c0_7 = arith.constant 0 : index
    %9 = vector.load %arg4[%c0_6, %c0_7] : memref<128x128xbf16, #tpu.memory_space<vmem>>, vector<128x128xbf16>
    %cst_8 = arith.constant dense<0.000000e+00> : vector<2x128xf32>
    %10 = tpu.matmul %8, %9, %cst_8 {dimension_numbers = #tpu.dot_dimension_numbers<[1], [0], [0], [1], [0, 0, 1, 1], [], []>} : vector<2x128xbf16>, vector<128x128xbf16>, vector<2x128xf32> -> vector<2x128xf32>
    %c0_9 = arith.constant 0 : index
    %c0_10 = arith.constant 0 : index
    %11 = vector.load %arg5[%c0_9, %c0_10] : memref<1x128xf32, #tpu.memory_space<vmem>>, vector<1x128xf32>
    %12 = vector.broadcast %11 : vector<1x128xf32> to vector<2x128xf32>
    %13 = arith.addf %10, %12 : vector<2x128xf32>
    %cst_11 = arith.constant 0.000000e+00 : f32
    %14 = vector.broadcast %cst_11 : f32 to vector<2x128xf32>
    %15 = arith.maximumf %13, %14 : vector<2x128xf32>
    %16 = arith.truncf %15 : vector<2x128xf32> to vector<2x128xbf16>
    %c0_12 = arith.constant 0 : index
    %c0_13 = arith.constant 0 : index
    %17 = vector.load %arg6[%c0_12, %c0_13] : memref<128x128xbf16, #tpu.memory_space<vmem>>, vector<128x128xbf16>
    %cst_14 = arith.constant dense<0.000000e+00> : vector<2x128xf32>
    %18 = tpu.matmul %16, %17, %cst_14 {dimension_numbers = #tpu.dot_dimension_numbers<[1], [0], [0], [1], [0, 0, 1, 1], [], []>} : vector<2x128xbf16>, vector<128x128xbf16>, vector<2x128xf32> -> vector<2x128xf32>
    %c0_15 = arith.constant 0 : index
    %c0_16 = arith.constant 0 : index
    %19 = vector.load %arg7[%c0_15, %c0_16] : memref<1x128xf32, #tpu.memory_space<vmem>>, vector<1x128xf32>
    %20 = vector.broadcast %19 : vector<1x128xf32> to vector<2x128xf32>
    %21 = arith.addf %18, %20 : vector<2x128xf32>
    %c0_17 = arith.constant 0 : index
    %c0_18 = arith.constant 0 : index
    %22 = vector.load %arg8[%c0_17, %c0_18] : memref<2x128xf32, #tpu.memory_space<vmem>>, vector<2x128xf32>
    tpu.vector_store %arg8[%c0_17, %c0_18], %21 {strides = array<i32>} : memref<2x128xf32, #tpu.memory_space<vmem>>, vector<2x128xf32>,
    return
  }
  func.func @transform_0(%arg0: i32) -> (i32, i32) {
    %c0_i32 = arith.constant 0 : i32
    %c0_i32_0 = arith.constant 0 : i32
    return %arg0, %c0_i32 : i32, i32
  }
  func.func @transform_1(%arg0: i32) -> (i32, i32) {
    %c0_i32 = arith.constant 0 : i32
    %c0_i32_0 = arith.constant 0 : i32
    %c0_i32_1 = arith.constant 0 : i32
    return %c0_i32, %c0_i32_0 : i32, i32
  }
  func.func @transform_2(%arg0: i32) -> (i32, i32) {
    %c0_i32 = arith.constant 0 : i32
    %c0_i32_0 = arith.constant 0 : i32
    %c0_i32_1 = arith.constant 0 : i32
    return %c0_i32, %c0_i32_0 : i32, i32
  }
  func.func @transform_3(%arg0: i32) -> (i32, i32) {
    %c0_i32 = arith.constant 0 : i32
    %c0_i32_0 = arith.constant 0 : i32
    %c0_i32_1 = arith.constant 0 : i32
    return %c0_i32, %c0_i32_0 : i32, i32
  }
  func.func @transform_4(%arg0: i32) -> (i32, i32) {
    %c0_i32 = arith.constant 0 : i32
    %c0_i32_0 = arith.constant 0 : i32
    %c0_i32_1 = arith.constant 0 : i32
    return %c0_i32, %c0_i32_0 : i32, i32
  }
  func.func @transform_5(%arg0: i32) -> (i32, i32) {
    %c0_i32 = arith.constant 0 : i32
    %c0_i32_0 = arith.constant 0 : i32
    %c0_i32_1 = arith.constant 0 : i32
    return %c0_i32, %c0_i32_0 : i32, i32
  }
  func.func @transform_6(%arg0: i32) -> (i32, i32) {
    %c0_i32 = arith.constant 0 : i32
    %c0_i32_0 = arith.constant 0 : i32
    %c0_i32_1 = arith.constant 0 : i32
    return %c0_i32, %c0_i32_0 : i32, i32
  }
  func.func @transform_7(%arg0: i32) -> (i32, i32) {
    %c0_i32 = arith.constant 0 : i32
    %c0_i32_0 = arith.constant 0 : i32
    return %arg0, %c0_i32 : i32, i32
  }
}

</mosaic_0001>

<bundles_post_ra>
// kernel: net_forward.3
= control target key start
LH: loop header
LB: loop body
LE: loop exit
PB: predicated region body
PF: predicated region fallthrough
CT: control target
= control target key end

     0   :  { %s2752_s12 = smov 0   ;;  %s2754_s13 = smov 0   ;;  %s3323_s0 = inlined_call_operand.vmem [shape: bf16[4,2,196,128], index: 0, kind: input, shape index: {}]   ;;  %s3324_s1 = inlined_call_operand.vmem [shape: bf16[128,128], index: 1, kind: input, shape index: {}]   ;;  %s3325_s2 = inlined_call_operand.vmem [shape: f32[1,128], index: 2, kind: input, shape index: {}]   ;;  %s3326_s3 = inlined_call_operand.vmem [shape: bf16[2,196,128], index: 3, kind: output, shape index: {}]  }
   0x1   :  { %s2756_s14 = smov 0  }
   0x2 LB: > { %s1994_s15 = sadd.s32 4294967295, %s2728_s14   ;;  %s2769_s16 = sadd.s32 1, %s2728_s14   ;;  %s2728_s14 = sphi %s2756_s14, %s3329_s14   ;;  %s2724_s13 = sphi %s2754_s13, %s3328_s13   ;;  %s2720_s12 = sphi %s2752_s12, %s3327_s12  }
   0x3   : > { %s17_s17 = ssub.s32 %s2728_s14, %s2769_s16  ;;  %s20_s18 = sadd.s32 1, %s2724_s13 }
   0x4   : > { %p18_p0 = scmp.eq.s32.totalorder %s17_s17, 0  ;;  %p27_p1 = scmp.ne.s32.totalorder %s2724_s13, %s2720_s12 }
   0x5   : > { %p28_p2 = scmp.eq.s32.totalorder %s2728_s14, 0  ;;  %p1997_p4 = scmp.ge.s32.totalorder %s2728_s14, 2 }
   0x6   : > { %s2778_s19 = scalar_select %p18_p0, %s2724_s13, %s20_s18  }
   0x7   : > { %p29_p3 = por %p28_p2, %p27_p1  ;;  %127 = sbr.rel (%p1997_p4) target bundleno = 45 (0x2d), region = 24 }
   0xe   : > { %130 = sbr.rel (!%p29_p3) target bundleno = 45 (0x2d), region = 28  ;;  %s132_s20 = sand.u32 (%p29_p3), 1, %s2724_s13  }
   0xf   : > { %s2617_s21 = smul.u32 (%p29_p3), 100, %s2728_s14 }
  0x10   : > { %s2616_s22 = smul.u32 (%p29_p3), 400, %s132_s20 }
  0x11   : > { %s2786_s25 = scalar_lea.vmem (%p29_p3), %s3323_s0, %s2617_s21 }
  0x12   : > { %v153_v0 = vld [vmem:[%s2786_s25] sm:$0xff] (%p29_p3)   ;;  %v157_v1 = vld [vmem:[%s2786_s25 + $0x8] sm:$0xff] (%p29_p3)   ;;  %v161_v2 = vld [vmem:[%s2786_s25 + $0x10] sm:$0xff] (%p29_p3)   ;;  %s2791_s26 = scalar_lea.vmem (%p29_p3), [#allocation2], %s2616_s22 }
  0x13   : > { %154 = vst [vmem:[%s2791_s26] sm:$0xff] (%p29_p3), %v153_v0   ;;  %158 = vst [vmem:[%s2791_s26 + $0x8] sm:$0xff] (%p29_p3), %v157_v1   ;;  %v165_v3 = vld [vmem:[%s2786_s25 + $0x18] sm:$0xff] (%p29_p3)   ;;  %v169_v4 = vld [vmem:[%s2786_s25 + $0x20] sm:$0xff] (%p29_p3)  }
  0x14   : > { %162 = vst [vmem:[%s2791_s26 + $0x10] sm:$0xff] (%p29_p3), %v161_v2   ;;  %v173_v5 = vld [vmem:[%s2786_s25 + $0x28] sm:$0xff] (%p29_p3)   ;;  %166 = vst [vmem:[%s2791_s26 + $0x18] sm:$0xff] (%p29_p3), %v165_v3   ;;  %v177_v6 = vld [vmem:[%s2786_s25 + $0x30] sm:$0xff] (%p29_p3)  }
  0x15   : > { %170 = vst [vmem:[%s2791_s26 + $0x20] sm:$0xff] %v169_v4   ;;  %174 = vst [vmem:[%s2791_s26 + $0x28] sm:$0xff] %v173_v5   ;;  %v181_v7 = vld [vmem:[%s2786_s25 + $0x38] sm:$0xff]   ;;  %v185_v8 = vld [vmem:[%s2786_s25 + $0x40] sm:$0xff]  }
  0x16   : > { %178 = vst [vmem:[%s2791_s26 + $0x30] sm:$0xff] %v177_v6   ;;  %182 = vst [vmem:[%s2791_s26 + $0x38] sm:$0xff] %v181_v7   ;;  %v189_v9 = vld [vmem:[%s2786_s25 + $0x48] sm:$0xff]   ;;  %v193_v10 = vld [vmem:[%s2786_s25 + $0x50] sm:$0xff]  }
  0x17   : > { %186 = vst [vmem:[%s2791_s26 + $0x40] sm:$0xff] %v185_v8   ;;  %v197_v11 = vld [vmem:[%s2786_s25 + $0x58] sm:$0xff]   ;;  %190 = vst [vmem:[%s2791_s26 + $0x48] sm:$0xff] %v189_v9   ;;  %v201_v12 = vld [vmem:[%s2786_s25 + $0x60] sm:$0xf] }
  0x18   : > { %194 = vst [vmem:[%s2791_s26 + $0x50] sm:$0xff] %v193_v10   ;;  %198 = vst [vmem:[%s2791_s26 + $0x58] sm:$0xff] %v197_v11   ;;  %v203_v13 = vld [vmem:[%s2786_s25 + $0xc8] sm:$0xff]   ;;  %v207_v14 = vld [vmem:[%s2786_s25 + $0xd0] sm:$0xff]  }
  0x19   : > { %202 = vst [vmem:[%s2791_s26 + $0x60] sm:$0xf] %v201_v12  ;;  %204 = vst [vmem:[%s2791_s26 + $0x64] sm:$0xff] %v203_v13   ;;  %v211_v15 = vld [vmem:[%s2786_s25 + $0xd8] sm:$0xff]   ;;  %v215_v16 = vld [vmem:[%s2786_s25 + $0xe0] sm:$0xff]  }
  0x1a   : > { %208 = vst [vmem:[%s2791_s26 + $0x6c] sm:$0xff] %v207_v14   ;;  %v219_v17 = vld [vmem:[%s2786_s25 + $0xe8] sm:$0xff]   ;;  %212 = vst [vmem:[%s2791_s26 + $0x74] sm:$0xff] %v211_v15   ;;  %v223_v18 = vld [vmem:[%s2786_s25 + $0xf0] sm:$0xff]  }
  0x1b   : > { %216 = vst [vmem:[%s2791_s26 + $0x7c] sm:$0xff] %v215_v16   ;;  %220 = vst [vmem:[%s2791_s26 + $0x84] sm:$0xff] %v219_v17   ;;  %v227_v19 = vld [vmem:[%s2786_s25 + $0xf8] sm:$0xff]   ;;  %v231_v20 = vld [vmem:[%s2786_s25 + $0x100] sm:$0xff]  }
  0x1c   : > { %224 = vst [vmem:[%s2791_s26 + $0x8c] sm:$0xff] %v223_v18   ;;  %228 = vst [vmem:[%s2791_s26 + $0x94] sm:$0xff] %v227_v19   ;;  %v235_v21 = vld [vmem:[%s2786_s25 + $0x108] sm:$0xff]   ;;  %v239_v22 = vld [vmem:[%s2786_s25 + $0x110] sm:$0xff]  }
  0x1d   : > { %232 = vst [vmem:[%s2791_s26 + $0x9c] sm:$0xff] %v231_v20   ;;  %v243_v23 = vld [vmem:[%s2786_s25 + $0x118] sm:$0xff]   ;;  %236 = vst [vmem:[%s2791_s26 + $0xa4] sm:$0xff] %v235_v21   ;;  %v247_v24 = vld [vmem:[%s2786_s25 + $0x120] sm:$0xff]  }
  0x1e   : > { %240 = vst [vmem:[%s2791_s26 + $0xac] sm:$0xff] %v239_v22   ;;  %244 = vst [vmem:[%s2791_s26 + $0xb4] sm:$0xff] %v243_v23   ;;  %v251_v25 = vld [vmem:[%s2786_s25 + $0x128] sm:$0xf]  ;;  %v253_v26 = vld [vmem:[%s2786_s25 + $0x190] sm:$0xff]  }
  0x1f   : > { %248 = vst [vmem:[%s2791_s26 + $0xbc] sm:$0xff] %v247_v24   ;;  %252 = vst [vmem:[%s2791_s26 + $0xc4] sm:$0xf] %v251_v25  ;;  %v257_v27 = vld [vmem:[%s2786_s25 + $0x198] sm:$0xff]   ;;  %v261_v28 = vld [vmem:[%s2786_s25 + $0x1a0] sm:$0xff]  }
  0x20   : > { %254 = vst [vmem:[%s2791_s26 + $0xc8] sm:$0xff] %v253_v26   ;;  %v265_v29 = vld [vmem:[%s2786_s25 + $0x1a8] sm:$0xff]   ;;  %258 = vst [vmem:[%s2791_s26 + $0xd0] sm:$0xff] %v257_v27   ;;  %v269_v30 = vld [vmem:[%s2786_s25 + $0x1b0] sm:$0xff]  }
  0x21   : > { %262 = vst [vmem:[%s2791_s26 + $0xd8] sm:$0xff] %v261_v28   ;;  %266 = vst [vmem:[%s2791_s26 + $0xe0] sm:$0xff] %v265_v29   ;;  %v273_v31 = vld [vmem:[%s2786_s25 + $0x1b8] sm:$0xff]   ;;  %v277_v32 = vld [vmem:[%s2786_s25 + $0x1c0] sm:$0xff]  }
  0x22   : > { %270 = vst [vmem:[%s2791_s26 + $0xe8] sm:$0xff] %v269_v30   ;;  %274 = vst [vmem:[%s2791_s26 + $0xf0] sm:$0xff] %v273_v31   ;;  %v281_v33 = vld [vmem:[%s2786_s25 + $0x1c8] sm:$0xff]   ;;  %v285_v34 = vld [vmem:[%s2786_s25 + $0x1d0] sm:$0xff]  }
  0x23   : > { %278 = vst [vmem:[%s2791_s26 + $0xf8] sm:$0xff] %v277_v32   ;;  %v289_v35 = vld [vmem:[%s2786_s25 + $0x1d8] sm:$0xff]   ;;  %282 = vst [vmem:[%s2791_s26 + $0x100] sm:$0xff] %v281_v33   ;;  %v293_v36 = vld [vmem:[%s2786_s25 + $0x1e0] sm:$0xff]  }
  0x24   : > { %286 = vst [vmem:[%s2791_s26 + $0x108] sm:$0xff] %v285_v34   ;;  %290 = vst [vmem:[%s2791_s26 + $0x110] sm:$0xff] %v289_v35   ;;  %v297_v37 = vld [vmem:[%s2786_s25 + $0x1e8] sm:$0xff]   ;;  %v301_v38 = vld [vmem:[%s2786_s25 + $0x1f0] sm:$0xf] }
  0x25   : > { %294 = vst [vmem:[%s2791_s26 + $0x118] sm:$0xff] %v293_v36   ;;  %298 = vst [vmem:[%s2791_s26 + $0x120] sm:$0xff] %v297_v37   ;;  %v303_v39 = vld [vmem:[%s2786_s25 + $0x258] sm:$0xff]   ;;  %v307_v40 = vld [vmem:[%s2786_s25 + $0x260] sm:$0xff]  }
  0x26   : > { %302 = vst [vmem:[%s2791_s26 + $0x128] sm:$0xf] %v301_v38  ;;  %v311_v41 = vld [vmem:[%s2786_s25 + $0x268] sm:$0xff]   ;;  %304 = vst [vmem:[%s2791_s26 + $0x12c] sm:$0xff] %v303_v39   ;;  %v315_v42 = vld [vmem:[%s2786_s25 + $0x270] sm:$0xff]  }
  0x27   : > { %308 = vst [vmem:[%s2791_s26 + $0x134] sm:$0xff] %v307_v40   ;;  %312 = vst [vmem:[%s2791_s26 + $0x13c] sm:$0xff] %v311_v41   ;;  %v319_v43 = vld [vmem:[%s2786_s25 + $0x278] sm:$0xff]   ;;  %v323_v44 = vld [vmem:[%s2786_s25 + $0x280] sm:$0xff]  }
  0x28   : > { %316 = vst [vmem:[%s2791_s26 + $0x144] sm:$0xff] %v315_v42   ;;  %320 = vst [vmem:[%s2791_s26 + $0x14c] sm:$0xff] %v319_v43   ;;  %v327_v45 = vld [vmem:[%s2786_s25 + $0x288] sm:$0xff]   ;;  %v331_v46 = vld [vmem:[%s2786_s25 + $0x290] sm:$0xff]  }
  0x29   : > { %324 = vst [vmem:[%s2791_s26 + $0x154] sm:$0xff] %v323_v44   ;;  %v335_v47 = vld [vmem:[%s2786_s25 + $0x298] sm:$0xff]   ;;  %328 = vst [vmem:[%s2791_s26 + $0x15c] sm:$0xff] %v327_v45   ;;  %v339_v48 = vld [vmem:[%s2786_s25 + $0x2a0] sm:$0xff]  }
  0x2a   : > { %332 = vst [vmem:[%s2791_s26 + $0x164] sm:$0xff] %v331_v46   ;;  %336 = vst [vmem:[%s2791_s26 + $0x16c] sm:$0xff] %v335_v47   ;;  %v343_v49 = vld [vmem:[%s2786_s25 + $0x2a8] sm:$0xff]   ;;  %v347_v50 = vld [vmem:[%s2786_s25 + $0x2b0] sm:$0xff]  }
  0x2b   : > { %340 = vst [vmem:[%s2791_s26 + $0x174] sm:$0xff] %v339_v48   ;;  %344 = vst [vmem:[%s2791_s26 + $0x17c] sm:$0xff] %v343_v49   ;;  %v351_v51 = vld [vmem:[%s2786_s25 + $0x2b8] sm:$0xf] }
  0x2c   : > { %348 = vst [vmem:[%s2791_s26 + $0x184] sm:$0xff] %v347_v50   ;;  %352 = vst [vmem:[%s2791_s26 + $0x18c] sm:$0xf] %v351_v51 }
  0x2d PF: > { %p1999_p5 = scmp.ge.s32.totalorder %s2728_s14, 1  ;;  %p574_p6 = scmp.lt.s32.totalorder %s2728_s14, 3 }
  0x2f   : > { %p575_p7 = pnand %p1999_p5, %p574_p6 }
  0x30   : > { %v2646_v52 = vld [vmem:[%s3324_s1] sm:$0xff] (!%p575_p7)   ;;  %v2730_v53 = vmov (!%p575_p7), 0.0   ;;  %v2647_v54 = vld [vmem:[%s3324_s1 + $0x8] sm:$0xff] (!%p575_p7)   ;;  %s581_s4 = sand.u32 (!%p575_p7), 1, %s2720_s12   ;;  %vm2731_vm0 = vmmov (!%p575_p7), 0   ;;  %v2648_v55 = vld [vmem:[%s3324_s1 + $0x10] sm:$0xff] (!%p575_p7)  }
  0x31   : > { %578 = sbr.rel (%p575_p7) target bundleno = 504 (0x1f8), region = 69  ;;  %2344 = vmatprep.subr.bf16.mxu0 (!%p575_p7), %v2730_v53  ;;  %2412 = vmatprep.subr.bf16.mxu1 (!%p575_p7), %v2730_v53  ;;  %v2649_v56 = vld [vmem:[%s3324_s1 + $0x18] sm:$0xff] (!%p575_p7)   ;;  %v2650_v57 = vld [vmem:[%s3324_s1 + $0x20] sm:$0xff] (!%p575_p7)   ;;  %v2651_v58 = vld [vmem:[%s3324_s1 + $0x28] sm:$0xff] (!%p575_p7)   ;;  %p604_p8 = scmp.lt.s32.totalorder (!%p575_p7), %s1994_s15, 1 }
  0x32   : > { %2345 = vmatpush3.bf16.msra.mxu0 (!%p575_p7), %v2646_v52  ;;  %2413 = vmatpush3.bf16.msra.mxu1 (!%p575_p7), %v2646_v52  ;;  %s2618_s5 = smul.u32 (!%p575_p7), 400, %s581_s4  ;;  %v2652_v59 = vld [vmem:[%s3324_s1 + $0x30] sm:$0xff] (!%p575_p7)   ;;  %v2653_v60 = vld [vmem:[%s3324_s1 + $0x38] sm:$0xff] (!%p575_p7)   ;;  %v3114_v49 = vld [vmem:[%s3325_s2] ss:$0 sm:$0xff] (!%p575_p7) }
  0x33   : > { %2346 = vmatprep.subr.bf16.mxu0 (!%p575_p7), %v2730_v53  ;;  %2414 = vmatprep.subr.bf16.mxu1 (!%p575_p7), %v2730_v53 }
  0x34   : > { %2360 = vmatprep.mubr.msk.bf16.mxu0 (!%p575_p7), %vm2731_vm0, %v2730_v53  ;;  %2428 = vmatprep.mubr.msk.bf16.mxu1 (!%p575_p7), %vm2731_vm0, %v2730_v53  ;;  %s2916_s8 = scalar_lea.vmem (!%p575_p7), [#allocation2], %s2618_s5 }
  0x35   : > { %v2654_v61 = vld [vmem:[%s2916_s8] sm:$0xff] (!%p575_p7)   ;;  %v2656_v63 = vld [vmem:[%s2916_s8 + $0x8] sm:$0xff] (!%p575_p7)   ;;  %v2658_v1 = vld [vmem:[%s2916_s8 + $0x10] sm:$0xff] (!%p575_p7)  }
  0x36   : > { %2347 = vmatpush3.bf16.msra.mxu0 (!%p575_p7), %v2647_v54  ;;  %2415 = vmatpush3.bf16.msra.mxu1 (!%p575_p7), %v2647_v54  ;;  %v2655_v62 = vld [vmem:[%s2916_s8 + $0x64] sm:$0xff] (!%p575_p7)   ;;  %v2657_v0 = vld [vmem:[%s2916_s8 + $0x6c] sm:$0xff] (!%p575_p7)   ;;  %v2659_v2 = vld [vmem:[%s2916_s8 + $0x74] sm:$0xff] (!%p575_p7)  }
  0x37   : > { %2348 = vmatprep.subr.bf16.mxu0 (!%p575_p7), %v2730_v53  ;;  %2416 = vmatprep.subr.bf16.mxu1 (!%p575_p7), %v2730_v53  ;;  %v2660_v3 = vld [vmem:[%s2916_s8 + $0x18] sm:$0xff] (!%p575_p7)   ;;  %v2662_v5 = vld [vmem:[%s2916_s8 + $0x20] sm:$0xff] (!%p575_p7)   ;;  %v2664_v7 = vld [vmem:[%s2916_s8 + $0x28] sm:$0xff] (!%p575_p7)  }
  0x38   : > { %v2661_v4 = vld [vmem:[%s2916_s8 + $0x7c] sm:$0xff]   ;;  %v2663_v6 = vld [vmem:[%s2916_s8 + $0x84] sm:$0xff]   ;;  %v2665_v8 = vld [vmem:[%s2916_s8 + $0x8c] sm:$0xff]   ;;  %s3331_s15 = smov (!%p604_p8, %s1994_s15), 1 }
  0x39   : > { %v2666_v9 = vld [vmem:[%s2916_s8 + $0x30] sm:$0xff]   ;;  %v2668_v11 = vld [vmem:[%s2916_s8 + $0x38] sm:$0xff]   ;;  %v2670_v13 = vld [vmem:[%s2916_s8 + $0x40] sm:$0xff]   ;;  %s2619_s26 = smul.u32 100, %s3331_s15 }
  0x3a   : > { %2349 = vmatpush3.bf16.msra.mxu0 %v2648_v55  ;;  %2417 = vmatpush3.bf16.msra.mxu1 %v2648_v55  ;;  %v2667_v10 = vld [vmem:[%s2916_s8 + $0x94] sm:$0xff]   ;;  %v2669_v12 = vld [vmem:[%s2916_s8 + $0x9c] sm:$0xff]   ;;  %v2671_v14 = vld [vmem:[%s2916_s8 + $0xa4] sm:$0xff]  }
  0x3b   : > { %2350 = vmatprep.subr.bf16.mxu0 %v2730_v53  ;;  %2418 = vmatprep.subr.bf16.mxu1 %v2730_v53  ;;  %v2672_v15 = vld [vmem:[%s2916_s8 + $0x48] sm:$0xff]   ;;  %v2674_v17 = vld [vmem:[%s2916_s8 + $0x50] sm:$0xff]   ;;  %v2676_v19 = vld [vmem:[%s2916_s8 + $0x58] sm:$0xff]   ;;  %s3231_s28 = scalar_lea.vmem %s3326_s3, %s2619_s26 }
  0x3c   : > { %v2673_v16 = vld [vmem:[%s2916_s8 + $0xac] sm:$0xff]   ;;  %v2675_v18 = vld [vmem:[%s2916_s8 + $0xb4] sm:$0xff]   ;;  %v2677_v20 = vld [vmem:[%s2916_s8 + $0xbc] sm:$0xff]  }
  0x3d   : > { %v2678_v21 = vld [vmem:[%s2916_s8 + $0x60] ss:$0 sps:$4 sm:$0x33]   ;;  %v2679_v22 = vld [vmem:[%s2916_s8 + $0xc4] ss:$0 sps:$4 sm:$0x33]  }
  0x3e   : > { %2351 = vmatpush3.bf16.msra.mxu0 %v2649_v56  ;;  %2419 = vmatpush3.bf16.msra.mxu1 %v2649_v56  ;;  %v2680_v23 = vld [vmem:[%s2916_s8 + $0xc8] sm:$0xff]   ;;  %v2682_v25 = vld [vmem:[%s2916_s8 + $0xd0] sm:$0xff]   ;;  %v2684_v27 = vld [vmem:[%s2916_s8 + $0xd8] sm:$0xff]  }
  0x3f   : > { %2352 = vmatprep.subr.bf16.mxu0 %v2730_v53  ;;  %2420 = vmatprep.subr.bf16.mxu1 %v2730_v53  ;;  %v2681_v24 = vld [vmem:[%s2916_s8 + $0x12c] sm:$0xff]   ;;  %v2683_v26 = vld [vmem:[%s2916_s8 + $0x134] sm:$0xff]   ;;  %v2685_v28 = vld [vmem:[%s2916_s8 + $0x13c] sm:$0xff]  }
  0x40   : > { %v2686_v29 = vld [vmem:[%s2916_s8 + $0xe0] sm:$0xff]   ;;  %v2688_v31 = vld [vmem:[%s2916_s8 + $0xe8] sm:$0xff]   ;;  %v2690_v33 = vld [vmem:[%s2916_s8 + $0xf0] sm:$0xff]  }
  0x41   : > { %v2687_v30 = vld [vmem:[%s2916_s8 + $0x144] sm:$0xff]   ;;  %v2689_v32 = vld [vmem:[%s2916_s8 + $0x14c] sm:$0xff]   ;;  %v2691_v34 = vld [vmem:[%s2916_s8 + $0x154] sm:$0xff]  }
  0x42   : > { %2353 = vmatpush3.bf16.msra.mxu0 %v2650_v57  ;;  %2421 = vmatpush3.bf16.msra.mxu1 %v2650_v57  ;;  %v2692_v35 = vld [vmem:[%s2916_s8 + $0xf8] sm:$0xff]   ;;  %v2694_v37 = vld [vmem:[%s2916_s8 + $0x100] sm:$0xff]   ;;  %v2696_v39 = vld [vmem:[%s2916_s8 + $0x108] sm:$0xff]  }
  0x43   : > { %2354 = vmatprep.subr.bf16.mxu0 %v2730_v53  ;;  %2422 = vmatprep.subr.bf16.mxu1 %v2730_v53  ;;  %v2693_v36 = vld [vmem:[%s2916_s8 + $0x15c] sm:$0xff]   ;;  %v2695_v38 = vld [vmem:[%s2916_s8 + $0x164] sm:$0xff]   ;;  %v2697_v40 = vld [vmem:[%s2916_s8 + $0x16c] sm:$0xff]  }
  0x44   : > { %v2698_v41 = vld [vmem:[%s2916_s8 + $0x110] sm:$0xff]   ;;  %v2700_v43 = vld [vmem:[%s2916_s8 + $0x118] sm:$0xff]   ;;  %v2702_v45 = vld [vmem:[%s2916_s8 + $0x120] sm:$0xff]  }
  0x45   : > { %v2699_v42 = vld [vmem:[%s2916_s8 + $0x174] sm:$0xff]   ;;  %v2701_v44 = vld [vmem:[%s2916_s8 + $0x17c] sm:$0xff]   ;;  %v2703_v46 = vld [vmem:[%s2916_s8 + $0x184] sm:$0xff]  }
  0x46   : > { %2355 = vmatpush3.bf16.msra.mxu0 %v2651_v58  ;;  %2423 = vmatpush3.bf16.msra.mxu1 %v2651_v58  ;;  %v2704_v47 = vld [vmem:[%s2916_s8 + $0x128] ss:$0 sps:$4 sm:$0x33]   ;;  %v2705_v48 = vld [vmem:[%s2916_s8 + $0x18c] ss:$0 sps:$4 sm:$0x33]  }
  0x47   : > { %2356 = vmatprep.subr.bf16.mxu0 %v2730_v53  ;;  %2424 = vmatprep.subr.bf16.mxu1 %v2730_v53 }
  0x4a   : > { %2357 = vmatpush3.bf16.msra.mxu0 %v2652_v59  ;;  %2425 = vmatpush3.bf16.msra.mxu1 %v2652_v59 }
  0x4b   : > { %2358 = vmatprep.subr.bf16.mxu0 %v2730_v53  ;;  %2426 = vmatprep.subr.bf16.mxu1 %v2730_v53 }
  0x4e   : > { %2359 = vmatpush3.bf16.msra.mxu0 %v2653_v60  ;;  %2427 = vmatpush3.bf16.msra.mxu1 %v2653_v60 }
  0x4f   : > { %2480 = vmatprep.subr.bf16.mxu0 %v2730_v53  ;;  %2548 = vmatprep.subr.bf16.mxu1 %v2730_v53 }
  0x51   : > { %2361 = vmatmul.mubr.bf16.vlgmr.msra.gmra.mrb[0].mxu0 %v2654_v61  ;;  %2429 = vmatmul.mubr.bf16.vlgmr.msra.gmra.mrb[0].mxu1 %v2655_v62 }
  0x52   : > { %2481 = vmatpush3.bf16.msra.mxu0 %v2646_v52  ;;  %2549 = vmatpush3.bf16.msra.mxu1 %v2646_v52 }
  0x53   : > { %2364 = vmatprep.mubr.msk.bf16.mxu0 %vm2731_vm0, %v2730_v53  ;;  %2432 = vmatprep.mubr.msk.bf16.mxu1 %vm2731_vm0, %v2730_v53 }
  0x54   : > { %2482 = vmatprep.subr.bf16.mxu0 %v2730_v53  ;;  %2550 = vmatprep.subr.bf16.mxu1 %v2730_v53 }
  0x56   : > { %2483 = vmatpush3.bf16.msra.mxu0 %v2647_v54  ;;  %2551 = vmatpush3.bf16.msra.mxu1 %v2647_v54 }
  0x57   : > { %2484 = vmatprep.subr.bf16.mxu0 %v2730_v53  ;;  %2552 = vmatprep.subr.bf16.mxu1 %v2730_v53 }
  0x59   : > { %2365 = vmatmul.mubr.bf16.gmra.mrb[4].mxu0 %v2656_v63  ;;  %2433 = vmatmul.mubr.bf16.gmra.mrb[4].mxu1 %v2657_v0 }
  0x5a   : > { %2368 = vmatprep.mubr.msk.bf16.mxu0 %vm2731_vm0, %v2730_v53  ;;  %2436 = vmatprep.mubr.msk.bf16.mxu1 %vm2731_vm0, %v2730_v53 }
  0x5b   : > { %2485 = vmatpush3.bf16.msra.mxu0 %v2648_v55  ;;  %2553 = vmatpush3.bf16.msra.mxu1 %v2648_v55 }
  0x5c   : > { %2486 = vmatprep.subr.bf16.mxu0 %v2730_v53  ;;  %2554 = vmatprep.subr.bf16.mxu1 %v2730_v53 }
  0x5f   : > { %2487 = vmatpush3.bf16.msra.mxu0 %v2649_v56  ;;  %2555 = vmatpush3.bf16.msra.mxu1 %v2649_v56 }
  0x60   : > { %2488 = vmatprep.subr.bf16.mxu0 %v2730_v53  ;;  %2556 = vmatprep.subr.bf16.mxu1 %v2730_v53 }
  0x61   : > { %2369 = vmatmul.mubr.bf16.gmra.mrb[8].mxu0 %v2658_v1  ;;  %2437 = vmatmul.mubr.bf16.gmra.mrb[8].mxu1 %v2659_v2 }
  0x62   : > { %2372 = vmatprep.mubr.msk.bf16.mxu0 %vm2731_vm0, %v2730_v53  ;;  %2440 = vmatprep.mubr.msk.bf16.mxu1 %vm2731_vm0, %v2730_v53 }
  0x63   : > { %2489 = vmatpush3.bf16.msra.mxu0 %v2650_v57  ;;  %2557 = vmatpush3.bf16.msra.mxu1 %v2650_v57 }
  0x64   : > { %2490 = vmatprep.subr.bf16.mxu0 %v2730_v53  ;;  %2558 = vmatprep.subr.bf16.mxu1 %v2730_v53 }
  0x67   : > { %2491 = vmatpush3.bf16.msra.mxu0 %v2651_v58  ;;  %2559 = vmatpush3.bf16.msra.mxu1 %v2651_v58 }
  0x68   : > { %2492 = vmatprep.subr.bf16.mxu0 %v2730_v53  ;;  %2560 = vmatprep.subr.bf16.mxu1 %v2730_v53 }
  0x69   : > { %2373 = vmatmul.mubr.bf16.gmra.mrb[12].mxu0 %v2660_v3  ;;  %2441 = vmatmul.mubr.bf16.gmra.mrb[12].mxu1 %v2661_v4 }
  0x6a   : > { %2376 = vmatprep.mubr.msk.bf16.mxu0 %vm2731_vm0, %v2730_v53  ;;  %2444 = vmatprep.mubr.msk.bf16.mxu1 %vm2731_vm0, %v2730_v53 }
  0x6b   : > { %2493 = vmatpush3.bf16.msra.mxu0 %v2652_v59  ;;  %2561 = vmatpush3.bf16.msra.mxu1 %v2652_v59 }
  0x6c   : > { %2494 = vmatprep.subr.bf16.mxu0 %v2730_v53  ;;  %2562 = vmatprep.subr.bf16.mxu1 %v2730_v53 }
  0x6f   : > { %2495 = vmatpush3.bf16.msra.mxu0 %v2653_v60  ;;  %2563 = vmatpush3.bf16.msra.mxu1 %v2653_v60 }
  0x71   : > { %2377 = vmatmul.mubr.bf16.gmra.mrb[16].mxu0 %v2662_v5  ;;  %2445 = vmatmul.mubr.bf16.gmra.mrb[16].mxu1 %v2663_v6 }
  0x72   : > { %2380 = vmatprep.mubr.msk.bf16.mxu0 %vm2731_vm0, %v2730_v53  ;;  %2448 = vmatprep.mubr.msk.bf16.mxu1 %vm2731_vm0, %v2730_v53 }
  0x79   : > { %2381 = vmatmul.mubr.bf16.gmra.mrb[20].mxu0 %v2664_v7  ;;  %2449 = vmatmul.mubr.bf16.gmra.mrb[20].mxu1 %v2665_v8 }
  0x7a   : > { %2384 = vmatprep.mubr.msk.bf16.mxu0 %vm2731_vm0, %v2730_v53  ;;  %2452 = vmatprep.mubr.msk.bf16.mxu1 %vm2731_vm0, %v2730_v53 }
  0x81   : > { %2385 = vmatmul.mubr.bf16.gmra.mrb[24].mxu0 %v2666_v9  ;;  %2453 = vmatmul.mubr.bf16.gmra.mrb[24].mxu1 %v2667_v10 }
  0x82   : > { %2388 = vmatprep.mubr.msk.bf16.mxu0 %vm2731_vm0, %v2730_v53  ;;  %2456 = vmatprep.mubr.msk.bf16.mxu1 %vm2731_vm0, %v2730_v53 }
  0x89   : > { %2389 = vmatmul.mubr.bf16.gmra.mrb[28].mxu0 %v2668_v11  ;;  %2457 = vmatmul.mubr.bf16.gmra.mrb[28].mxu1 %v2669_v12 }
  0x8a   : > { %2392 = vmatprep.mubr.msk.bf16.mxu0 %vm2731_vm0, %v2730_v53  ;;  %2460 = vmatprep.mubr.msk.bf16.mxu1 %vm2731_vm0, %v2730_v53 }
  0x91   : > { %2393 = vmatmul.mubr.bf16.gmra.mrb[32].mxu0 %v2670_v13  ;;  %2461 = vmatmul.mubr.bf16.gmra.mrb[32].mxu1 %v2671_v14 }
  0x92   : > { %2396 = vmatprep.mubr.msk.bf16.mxu0 %vm2731_vm0, %v2730_v53  ;;  %2464 = vmatprep.mubr.msk.bf16.mxu1 %vm2731_vm0, %v2730_v53 }
  0x99   : > { %2397 = vmatmul.mubr.bf16.gmra.mrb[36].mxu0 %v2672_v15  ;;  %2465 = vmatmul.mubr.bf16.gmra.mrb[36].mxu1 %v2673_v16 }
  0x9a   : > { %2400 = vmatprep.mubr.msk.bf16.mxu0 %vm2731_vm0, %v2730_v53  ;;  %2468 = vmatprep.mubr.msk.bf16.mxu1 %vm2731_vm0, %v2730_v53 }
  0xa1   : > { %2401 = vmatmul.mubr.bf16.gmra.mrb[40].mxu0 %v2674_v17  ;;  %2469 = vmatmul.mubr.bf16.gmra.mrb[40].mxu1 %v2675_v18 }
  0xa2   : > { %2404 = vmatprep.mubr.msk.bf16.mxu0 %vm2731_vm0, %v2730_v53  ;;  %2472 = vmatprep.mubr.msk.bf16.mxu1 %vm2731_vm0, %v2730_v53 }
  0xa9   : > { %2405 = vmatmul.mubr.bf16.gmra.mrb[44].mxu0 %v2676_v19  ;;  %2473 = vmatmul.mubr.bf16.gmra.mrb[44].mxu1 %v2677_v20 }
  0xaa   : > { %2408 = vmatprep.mubr.msk.bf16.mxu0 %vm2731_vm0, %v2730_v53  ;;  %2476 = vmatprep.mubr.msk.bf16.mxu1 %vm2731_vm0, %v2730_v53 }
  0xb1   : > { %2409 = vmatmul.mubr.bf16.gmra.mrb[48].mxu0 %v2678_v21  ;;  %2477 = vmatmul.mubr.bf16.gmra.mrb[48].mxu1 %v2679_v22 }
  0xb2   : > { %2496 = vmatprep.mubr.msk.bf16.mxu0 %vm2731_vm0, %v2730_v53  ;;  %2564 = vmatprep.mubr.msk.bf16.mxu1 %vm2731_vm0, %v2730_v53 }
  0xb9   : > { %2497 = vmatmul.mubr.bf16.vlgmr.msra.gmra.mrb[52].mxu0 %v2680_v23  ;;  %2565 = vmatmul.mubr.bf16.vlgmr.msra.gmra.mrb[52].mxu1 %v2681_v24 }
  0xba   : > { %2500 = vmatprep.mubr.msk.bf16.mxu0 %vm2731_vm0, %v2730_v53  ;;  %2568 = vmatprep.mubr.msk.bf16.mxu1 %vm2731_vm0, %v2730_v53 }
  0xc1   : > { %2501 = vmatmul.mubr.bf16.gmra.mrb[56].mxu0 %v2682_v25  ;;  %2569 = vmatmul.mubr.bf16.gmra.mrb[56].mxu1 %v2683_v26 }
  0xc2   : > { %2504 = vmatprep.mubr.msk.bf16.mxu0 %vm2731_vm0, %v2730_v53  ;;  %2572 = vmatprep.mubr.msk.bf16.mxu1 %vm2731_vm0, %v2730_v53 }
  0xc9   : > { %2505 = vmatmul.mubr.bf16.gmra.mrb[60].mxu0 %v2684_v27  ;;  %2573 = vmatmul.mubr.bf16.gmra.mrb[60].mxu1 %v2685_v28 }
  0xca   : > { %2508 = vmatprep.mubr.msk.bf16.mxu0 %vm2731_vm0, %v2730_v53  ;;  %2576 = vmatprep.mubr.msk.bf16.mxu1 %vm2731_vm0, %v2730_v53 }
  0xd1   : > { %2509 = vmatmul.mubr.bf16.gmra.mrb[64].mxu0 %v2686_v29  ;;  %2577 = vmatmul.mubr.bf16.gmra.mrb[64].mxu1 %v2687_v30 }
  0xd2   : > { %2512 = vmatprep.mubr.msk.bf16.mxu0 %vm2731_vm0, %v2730_v53  ;;  %2580 = vmatprep.mubr.msk.bf16.mxu1 %vm2731_vm0, %v2730_v53 }
  0xd9   : > { %2513 = vmatmul.mubr.bf16.gmra.mrb[68].mxu0 %v2688_v31  ;;  %2581 = vmatmul.mubr.bf16.gmra.mrb[68].mxu1 %v2689_v32 }
  0xda   : > { %2516 = vmatprep.mubr.msk.bf16.mxu0 %vm2731_vm0, %v2730_v53  ;;  %2584 = vmatprep.mubr.msk.bf16.mxu1 %vm2731_vm0, %v2730_v53 }
  0xe1   : > { %2517 = vmatmul.mubr.bf16.gmra.mrb[72].mxu0 %v2690_v33  ;;  %2585 = vmatmul.mubr.bf16.gmra.mrb[72].mxu1 %v2691_v34 }
  0xe2   : > { %2520 = vmatprep.mubr.msk.bf16.mxu0 %vm2731_vm0, %v2730_v53  ;;  %2588 = vmatprep.mubr.msk.bf16.mxu1 %vm2731_vm0, %v2730_v53 }
  0xe9   : > { %2521 = vmatmul.mubr.bf16.gmra.mrb[76].mxu0 %v2692_v35  ;;  %2589 = vmatmul.mubr.bf16.gmra.mrb[76].mxu1 %v2693_v36 }
  0xea   : > { %2524 = vmatprep.mubr.msk.bf16.mxu0 %vm2731_vm0, %v2730_v53  ;;  %2592 = vmatprep.mubr.msk.bf16.mxu1 %vm2731_vm0, %v2730_v53 }
  0xf1   : > { %2525 = vmatmul.mubr.bf16.gmra.mrb[80].mxu0 %v2694_v37  ;;  %2593 = vmatmul.mubr.bf16.gmra.mrb[80].mxu1 %v2695_v38 }
  0xf2   : > { %2528 = vmatprep.mubr.msk.bf16.mxu0 %vm2731_vm0, %v2730_v53  ;;  %2596 = vmatprep.mubr.msk.bf16.mxu1 %vm2731_vm0, %v2730_v53 }
  0xf9   : > { %2529 = vmatmul.mubr.bf16.gmra.mrb[84].mxu0 %v2696_v39  ;;  %2597 = vmatmul.mubr.bf16.gmra.mrb[84].mxu1 %v2697_v40 }
  0xfa   : > { %2532 = vmatprep.mubr.msk.bf16.mxu0 %vm2731_vm0, %v2730_v53  ;;  %2600 = vmatprep.mubr.msk.bf16.mxu1 %vm2731_vm0, %v2730_v53 }
 0x101   : > { %2533 = vmatmul.mubr.bf16.gmra.mrb[88].mxu0 %v2698_v41  ;;  %2601 = vmatmul.mubr.bf16.gmra.mrb[88].mxu1 %v2699_v42 }
 0x102   : > { %2536 = vmatprep.mubr.msk.bf16.mxu0 %vm2731_vm0, %v2730_v53  ;;  %2604 = vmatprep.mubr.msk.bf16.mxu1 %vm2731_vm0, %v2730_v53 }
 0x109   : > { %2537 = vmatmul.mubr.bf16.gmra.mrb[92].mxu0 %v2700_v43  ;;  %2605 = vmatmul.mubr.bf16.gmra.mrb[92].mxu1 %v2701_v44 }
 0x10a   : > { %2540 = vmatprep.mubr.msk.bf16.mxu0 %vm2731_vm0, %v2730_v53  ;;  %2608 = vmatprep.mubr.msk.bf16.mxu1 %vm2731_vm0, %v2730_v53 }
 0x111   : > { %2541 = vmatmul.mubr.bf16.gmra.mrb[96].mxu0 %v2702_v45  ;;  %2609 = vmatmul.mubr.bf16.gmra.mrb[96].mxu1 %v2703_v46 }
 0x112   : > { %2544 = vmatprep.mubr.msk.bf16.mxu0 %vm2731_vm0, %v2730_v53  ;;  %2612 = vmatprep.mubr.msk.bf16.mxu1 %vm2731_vm0, %v2730_v53 }
 0x119   : > { %2545 = vmatmul.mubr.bf16.gmra.mrb[100].mxu0 %v2704_v47  ;;  %2613 = vmatmul.mubr.bf16.gmra.mrb[100].mxu1 %v2705_v48 }
 0x124   : > { %v816_v50 = vpop.f32.mrb[0].mxu0  ;;  %v1079_v51 = vpop.f32.mrb[0].mxu1 }
 0x125   : > { %v817_v52 = vadd.f32 %v3114_v49, %v816_v50  ;;  %v1080_v54 = vadd.f32 %v3114_v49, %v1079_v51  ;;  %v2362_v55 = vpop.f32.mrb[1].mxu0  ;;  %v2430_v56 = vpop.f32.mrb[1].mxu1 }
 0x126   : > { %v819_v57 = vpop.f32.mrb[2].mxu0  ;;  %v1082_v58 = vpop.f32.mrb[2].mxu1 }
 0x127   : > { %v918_v53 = vmax.f32 %v817_v52, 0.0  ;;  %v1181_v59 = vmax.f32 %v1080_v54, 0.0  ;;  %v820_v60 = vadd.f32 %v3114_v49, %v819_v57  ;;  %v1083_v61 = vadd.f32 %v3114_v49, %v1082_v58  ;;  %v2363_v62 = vpop.f32.mrb[3].mxu0  ;;  %v2431_v63 = vpop.f32.mrb[3].mxu1 }
 0x129   : > { %v3120_v0 = vmax.f32 %v918_v53, %v1181_v59  ;;  %v919_v1 = vmax.f32 %v820_v60, 0.0  ;;  %v1182_v2 = vmax.f32 %v1083_v61, 0.0 }
 0x12b   : > { %v3122_v3 = vmax.f32 %v919_v1, %v1182_v2 }
 0x12c   : > { %v824_v4 = vpop.f32.mrb[4].mxu0  ;;  %v1087_v5 = vpop.f32.mrb[4].mxu1 }
 0x12d   : > { %v825_v6 = vadd.f32 %v3114_v49, %v824_v4  ;;  %v1088_v7 = vadd.f32 %v3114_v49, %v1087_v5  ;;  %v2366_v8 = vpop.f32.mrb[5].mxu0  ;;  %v2434_v9 = vpop.f32.mrb[5].mxu1 }
 0x12e   : > { %v827_v10 = vpop.f32.mrb[6].mxu0  ;;  %v1090_v11 = vpop.f32.mrb[6].mxu1 }
 0x12f   : > { %v920_v12 = vmax.f32 %v825_v6, 0.0  ;;  %v1183_v13 = vmax.f32 %v1088_v7, 0.0  ;;  %v828_v14 = vadd.f32 %v3114_v49, %v827_v10  ;;  %v1091_v15 = vadd.f32 %v3114_v49, %v1090_v11  ;;  %v2367_v16 = vpop.f32.mrb[7].mxu0  ;;  %v2435_v17 = vpop.f32.mrb[7].mxu1 }
 0x131   : > { %v3128_v18 = vmax.f32 %v920_v12, %v1183_v13  ;;  %v921_v19 = vmax.f32 %v828_v14, 0.0  ;;  %v1184_v20 = vmax.f32 %v1091_v15, 0.0 }
 0x133   : > { %v3130_v21 = vmax.f32 %v921_v19, %v1184_v20 }
 0x134   : > { %v832_v22 = vpop.f32.mrb[8].mxu0  ;;  %v1095_v23 = vpop.f32.mrb[8].mxu1 }
 0x135   : > { %v833_v24 = vadd.f32 %v3114_v49, %v832_v22  ;;  %v1096_v25 = vadd.f32 %v3114_v49, %v1095_v23  ;;  %v2370_v26 = vpop.f32.mrb[9].mxu0  ;;  %v2438_v27 = vpop.f32.mrb[9].mxu1 }
 0x136   : > { %v835_v28 = vpop.f32.mrb[10].mxu0  ;;  %v1098_v29 = vpop.f32.mrb[10].mxu1 }
 0x137   : > { %v922_v30 = vmax.f32 %v833_v24, 0.0  ;;  %v1185_v31 = vmax.f32 %v1096_v25, 0.0  ;;  %v836_v32 = vadd.f32 %v3114_v49, %v835_v28  ;;  %v1099_v33 = vadd.f32 %v3114_v49, %v1098_v29  ;;  %v2371_v34 = vpop.f32.mrb[11].mxu0  ;;  %v2439_v35 = vpop.f32.mrb[11].mxu1 }
 0x139   : > { %v3136_v36 = vmax.f32 %v922_v30, %v1185_v31  ;;  %v923_v37 = vmax.f32 %v836_v32, 0.0  ;;  %v1186_v38 = vmax.f32 %v1099_v33, 0.0 }
 0x13b   : > { %v3138_v39 = vmax.f32 %v923_v37, %v1186_v38 }
 0x13c   : > { %v840_v40 = vpop.f32.mrb[12].mxu0  ;;  %v1103_v41 = vpop.f32.mrb[12].mxu1 }
 0x13d   : > { %v841_v42 = vadd.f32 %v3114_v49, %v840_v40  ;;  %v1104_v43 = vadd.f32 %v3114_v49, %v1103_v41  ;;  %v2374_v44 = vpop.f32.mrb[13].mxu0  ;;  %v2442_v45 = vpop.f32.mrb[13].mxu1 }
 0x13e   : > { %v843_v46 = vpop.f32.mrb[14].mxu0  ;;  %v1106_v47 = vpop.f32.mrb[14].mxu1 }
 0x13f   : > { %v924_v48 = vmax.f32 %v841_v42, 0.0  ;;  %v1187_v50 = vmax.f32 %v1104_v43, 0.0  ;;  %v844_v51 = vadd.f32 %v3114_v49, %v843_v46  ;;  %v1107_v52 = vadd.f32 %v3114_v49, %v1106_v47  ;;  %v2375_v54 = vpop.f32.mrb[15].mxu0  ;;  %v2443_v55 = vpop.f32.mrb[15].mxu1 }
 0x141   : > { %v3144_v56 = vmax.f32 %v924_v48, %v1187_v50  ;;  %v925_v57 = vmax.f32 %v844_v51, 0.0  ;;  %v1188_v58 = vmax.f32 %v1107_v52, 0.0 }
 0x143   : > { %v3146_v53 = vmax.f32 %v925_v57, %v1188_v58 }
 0x144   : > { %v848_v59 = vpop.f32.mrb[16].mxu0  ;;  %v1111_v60 = vpop.f32.mrb[16].mxu1 }
 0x145   : > { %v849_v61 = vadd.f32 %v3114_v49, %v848_v59  ;;  %v1112_v62 = vadd.f32 %v3114_v49, %v1111_v60  ;;  %v2378_v63 = vpop.f32.mrb[17].mxu0  ;;  %v2446_v1 = vpop.f32.mrb[17].mxu1 }
 0x146   : > { %v851_v2 = vpop.f32.mrb[18].mxu0  ;;  %v1114_v4 = vpop.f32.mrb[18].mxu1 }
 0x147   : > { %v926_v5 = vmax.f32 %v849_v61, 0.0  ;;  %v1189_v6 = vmax.f32 %v1112_v62, 0.0  ;;  %v852_v7 = vadd.f32 %v3114_v49, %v851_v2  ;;  %v1115_v8 = vadd.f32 %v3114_v49, %v1114_v4  ;;  %v2379_v9 = vpop.f32.mrb[19].mxu0  ;;  %v2447_v10 = vpop.f32.mrb[19].mxu1 }
 0x149   : > { %v3152_v11 = vmax.f32 %v926_v5, %v1189_v6  ;;  %v927_v12 = vmax.f32 %v852_v7, 0.0  ;;  %v1190_v13 = vmax.f32 %v1115_v8, 0.0 }
 0x14b   : > { %v3154_v14 = vmax.f32 %v927_v12, %v1190_v13 }
 0x14c   : > { %v856_v15 = vpop.f32.mrb[20].mxu0  ;;  %v1119_v16 = vpop.f32.mrb[20].mxu1 }
 0x14d   : > { %v857_v17 = vadd.f32 %v3114_v49, %v856_v15  ;;  %v1120_v19 = vadd.f32 %v3114_v49, %v1119_v16  ;;  %v2382_v20 = vpop.f32.mrb[21].mxu0  ;;  %v2450_v22 = vpop.f32.mrb[21].mxu1 }
 0x14e   : > { %v859_v23 = vpop.f32.mrb[22].mxu0  ;;  %v1122_v24 = vpop.f32.mrb[22].mxu1 }
 0x14f   : > { %v928_v25 = vmax.f32 %v857_v17, 0.0  ;;  %v1191_v26 = vmax.f32 %v1120_v19, 0.0  ;;  %v860_v27 = vadd.f32 %v3114_v49, %v859_v23  ;;  %v1123_v28 = vadd.f32 %v3114_v49, %v1122_v24  ;;  %v2383_v29 = vpop.f32.mrb[23].mxu0  ;;  %v2451_v30 = vpop.f32.mrb[23].mxu1 }
 0x151   : > { %v3160_v31 = vmax.f32 %v928_v25, %v1191_v26  ;;  %v929_v32 = vmax.f32 %v860_v27, 0.0  ;;  %v1192_v33 = vmax.f32 %v1123_v28, 0.0 }
 0x153   : > { %v3162_v34 = vmax.f32 %v929_v32, %v1192_v33 }
 0x154   : > { %v864_v35 = vpop.f32.mrb[24].mxu0  ;;  %v1127_v37 = vpop.f32.mrb[24].mxu1 }
 0x155   : > { %v865_v38 = vadd.f32 %v3114_v49, %v864_v35  ;;  %v1128_v40 = vadd.f32 %v3114_v49, %v1127_v37  ;;  %v2386_v41 = vpop.f32.mrb[25].mxu0  ;;  %v2454_v42 = vpop.f32.mrb[25].mxu1 }
 0x156   : > { %v867_v43 = vpop.f32.mrb[26].mxu0  ;;  %v1130_v44 = vpop.f32.mrb[26].mxu1 }
 0x157   : > { %v930_v45 = vmax.f32 %v865_v38, 0.0  ;;  %v1193_v46 = vmax.f32 %v1128_v40, 0.0  ;;  %v868_v47 = vadd.f32 %v3114_v49, %v867_v43  ;;  %v1131_v48 = vadd.f32 %v3114_v49, %v1130_v44  ;;  %v2387_v50 = vpop.f32.mrb[27].mxu0  ;;  %v2455_v51 = vpop.f32.mrb[27].mxu1 }
 0x159   : > { %v3168_v52 = vmax.f32 %v930_v45, %v1193_v46  ;;  %v931_v54 = vmax.f32 %v868_v47, 0.0  ;;  %v1194_v55 = vmax.f32 %v1131_v48, 0.0 }
 0x15b   : > { %v3170_v57 = vmax.f32 %v931_v54, %v1194_v55 }
 0x15c   : > { %v872_v58 = vpop.f32.mrb[28].mxu0  ;;  %v1135_v59 = vpop.f32.mrb[28].mxu1 }
 0x15d   : > { %v873_v60 = vadd.f32 %v3114_v49, %v872_v58  ;;  %v1136_v61 = vadd.f32 %v3114_v49, %v1135_v59  ;;  %v2390_v62 = vpop.f32.mrb[29].mxu0  ;;  %v2458_v63 = vpop.f32.mrb[29].mxu1 }
 0x15e   : > { %v875_v1 = vpop.f32.mrb[30].mxu0  ;;  %v1138_v2 = vpop.f32.mrb[30].mxu1 }
 0x15f   : > { %v932_v4 = vmax.f32 %v873_v60, 0.0  ;;  %v1195_v5 = vmax.f32 %v1136_v61, 0.0  ;;  %v876_v6 = vadd.f32 %v3114_v49, %v875_v1  ;;  %v1139_v7 = vadd.f32 %v3114_v49, %v1138_v2  ;;  %v2391_v8 = vpop.f32.mrb[31].mxu0  ;;  %v2459_v9 = vpop.f32.mrb[31].mxu1 }
 0x161   : > { %v3176_v10 = vmax.f32 %v932_v4, %v1195_v5  ;;  %v933_v12 = vmax.f32 %v876_v6, 0.0  ;;  %v1196_v13 = vmax.f32 %v1139_v7, 0.0 }
 0x163   : > { %v3178_v15 = vmax.f32 %v933_v12, %v1196_v13 }
 0x164   : > { %v880_v16 = vpop.f32.mrb[32].mxu0  ;;  %v1143_v17 = vpop.f32.mrb[32].mxu1 }
 0x165   : > { %v881_v19 = vadd.f32 %v3114_v49, %v880_v16  ;;  %v1144_v20 = vadd.f32 %v3114_v49, %v1143_v17  ;;  %v2394_v22 = vpop.f32.mrb[33].mxu0  ;;  %v2462_v23 = vpop.f32.mrb[33].mxu1 }
 0x166   : > { %v883_v24 = vpop.f32.mrb[34].mxu0  ;;  %v1146_v25 = vpop.f32.mrb[34].mxu1 }
 0x167   : > { %v934_v26 = vmax.f32 %v881_v19, 0.0  ;;  %v1197_v27 = vmax.f32 %v1144_v20, 0.0  ;;  %v884_v28 = vadd.f32 %v3114_v49, %v883_v24  ;;  %v1147_v29 = vadd.f32 %v3114_v49, %v1146_v25  ;;  %v2395_v30 = vpop.f32.mrb[35].mxu0  ;;  %v2463_v32 = vpop.f32.mrb[35].mxu1 }
 0x169   : > { %v3184_v33 = vmax.f32 %v934_v26, %v1197_v27  ;;  %v935_v35 = vmax.f32 %v884_v28, 0.0  ;;  %v1198_v37 = vmax.f32 %v1147_v29, 0.0 }
 0x16b   : > { %v3186_v38 = vmax.f32 %v935_v35, %v1198_v37 }
 0x16c   : > { %v888_v40 = vpop.f32.mrb[36].mxu0  ;;  %v1151_v41 = vpop.f32.mrb[36].mxu1 }
 0x16d   : > { %v889_v42 = vadd.f32 %v3114_v49, %v888_v40  ;;  %v1152_v43 = vadd.f32 %v3114_v49, %v1151_v41  ;;  %v2398_v44 = vpop.f32.mrb[37].mxu0  ;;  %v2466_v45 = vpop.f32.mrb[37].mxu1 }
 0x16e   : > { %v891_v46 = vpop.f32.mrb[38].mxu0  ;;  %v1154_v47 = vpop.f32.mrb[38].mxu1 }
 0x16f   : > { %v936_v48 = vmax.f32 %v889_v42, 0.0  ;;  %v1199_v50 = vmax.f32 %v1152_v43, 0.0  ;;  %v892_v51 = vadd.f32 %v3114_v49, %v891_v46  ;;  %v1155_v54 = vadd.f32 %v3114_v49, %v1154_v47  ;;  %v2399_v55 = vpop.f32.mrb[39].mxu0  ;;  %v2467_v58 = vpop.f32.mrb[39].mxu1 }
 0x171   : > { %v3192_v59 = vmax.f32 %v936_v48, %v1199_v50  ;;  %v937_v60 = vmax.f32 %v892_v51, 0.0  ;;  %v1200_v61 = vmax.f32 %v1155_v54, 0.0 }
 0x173   : > { %v3194_v62 = vmax.f32 %v937_v60, %v1200_v61 }
 0x174   : > { %v896_v63 = vpop.f32.mrb[40].mxu0  ;;  %v1159_v1 = vpop.f32.mrb[40].mxu1 }
 0x175   : > { %v897_v2 = vadd.f32 %v3114_v49, %v896_v63  ;;  %v1160_v4 = vadd.f32 %v3114_v49, %v1159_v1  ;;  %v2402_v5 = vpop.f32.mrb[41].mxu0  ;;  %v2470_v6 = vpop.f32.mrb[41].mxu1 }
 0x176   : > { %v899_v7 = vpop.f32.mrb[42].mxu0  ;;  %v1162_v8 = vpop.f32.mrb[42].mxu1 }
 0x177   : > { %v938_v9 = vmax.f32 %v897_v2, 0.0  ;;  %v1201_v12 = vmax.f32 %v1160_v4, 0.0  ;;  %v900_v13 = vadd.f32 %v3114_v49, %v899_v7  ;;  %v1163_v16 = vadd.f32 %v3114_v49, %v1162_v8  ;;  %v2403_v17 = vpop.f32.mrb[43].mxu0  ;;  %v2471_v19 = vpop.f32.mrb[43].mxu1 }
 0x179   : > { %v3200_v20 = vmax.f32 %v938_v9, %v1201_v12  ;;  %v939_v22 = vmax.f32 %v900_v13, 0.0  ;;  %v1202_v23 = vmax.f32 %v1163_v16, 0.0 }
 0x17b   : > { %v3202_v24 = vmax.f32 %v939_v22, %v1202_v23 }
 0x17c   : > { %v904_v25 = vpop.f32.mrb[44].mxu0  ;;  %v1167_v26 = vpop.f32.mrb[44].mxu1 }
 0x17d   : > { %v905_v27 = vadd.f32 %v3114_v49, %v904_v25  ;;  %v1168_v28 = vadd.f32 %v3114_v49, %v1167_v26  ;;  %v2406_v29 = vpop.f32.mrb[45].mxu0  ;;  %v2474_v30 = vpop.f32.mrb[45].mxu1 }
 0x17e   : > { %v907_v32 = vpop.f32.mrb[46].mxu0  ;;  %v1170_v35 = vpop.f32.mrb[46].mxu1 }
 0x17f   : > { %v940_v37 = vmax.f32 %v905_v27, 0.0  ;;  %v1203_v40 = vmax.f32 %v1168_v28, 0.0  ;;  %v908_v41 = vadd.f32 %v3114_v49, %v907_v32  ;;  %v1171_v42 = vadd.f32 %v3114_v49, %v1170_v35  ;;  %v2407_v43 = vpop.f32.mrb[47].mxu0  ;;  %v2475_v44 = vpop.f32.mrb[47].mxu1 }
 0x181   : > { %v3208_v45 = vmax.f32 %v940_v37, %v1203_v40  ;;  %v941_v46 = vmax.f32 %v908_v41, 0.0  ;;  %v1204_v47 = vmax.f32 %v1171_v42, 0.0 }
 0x183   : > { %v3210_v48 = vmax.f32 %v941_v46, %v1204_v47 }
 0x184   : > { %v912_v50 = vpop.f32.mrb[48].mxu0  ;;  %v1175_v51 = vpop.f32.mrb[48].mxu1 }
 0x185   : > { %v913_v54 = vadd.f32 %v3114_v49, %v912_v50  ;;  %v1176_v55 = vadd.f32 %v3114_v49, %v1175_v51  ;;  %v2410_v58 = vpop.f32.mrb[49].mxu0  ;;  %v2478_v60 = vpop.f32.mrb[49].mxu1 }
 0x186   : > { %v915_v61 = vpop.f32.mrb[50].mxu0  ;;  %v1178_v63 = vpop.f32.mrb[50].mxu1 }
 0x187   : > { %v942_v1 = vmax.f32 %v913_v54, 0.0  ;;  %v1205_v2 = vmax.f32 %v1176_v55, 0.0  ;;  %v2411_v4 = vpop.f32.mrb[51].mxu0  ;;  %v2479_v5 = vpop.f32.mrb[51].mxu1 }
 0x189   : > { %v3214_v6 = vmax.f32 %v942_v1, %v1205_v2 }
 0x18c   : > { %v1367_v7 = vpop.f32.mrb[52].mxu0  ;;  %v1630_v8 = vpop.f32.mrb[52].mxu1 }
 0x18d   : > { %v1368_v9 = vadd.f32 %v3114_v49, %v1367_v7  ;;  %v1631_v12 = vadd.f32 %v3114_v49, %v1630_v8  ;;  %v2498_v13 = vpop.f32.mrb[53].mxu0  ;;  %v2566_v16 = vpop.f32.mrb[53].mxu1 }
 0x18e   : > { %v1370_v17 = vpop.f32.mrb[54].mxu0  ;;  %v1633_v19 = vpop.f32.mrb[54].mxu1 }
 0x18f   : > { %v1469_v22 = vmax.f32 %v1368_v9, 0.0  ;;  %v1732_v23 = vmax.f32 %v1631_v12, 0.0  ;;  %v1371_v25 = vadd.f32 %v3114_v49, %v1370_v17  ;;  %v1634_v26 = vadd.f32 %v3114_v49, %v1633_v19  ;;  %v2499_v27 = vpop.f32.mrb[55].mxu0  ;;  %v2567_v28 = vpop.f32.mrb[55].mxu1 }
 0x191   : > { %v1757_v29 = vmax.f32 %v1469_v22, %v1732_v23  ;;  %v1470_v30 = vmax.f32 %v1371_v25, 0.0  ;;  %v1733_v32 = vmax.f32 %v1634_v26, 0.0 }
 0x193   : > { %v1782_v35 = vmax.f32 %v3120_v0, %v1757_v29  ;;  %v1758_v37 = vmax.f32 %v1470_v30, %v1733_v32 }
 0x194   : > { %v1375_v40 = vpop.f32.mrb[56].mxu0  ;;  %v1638_v41 = vpop.f32.mrb[56].mxu1 }
 0x195   : > { %v1783_v42 = vmax.f32 %v3122_v3, %v1758_v37  ;;  %v1376_v43 = vadd.f32 %v3114_v49, %v1375_v40  ;;  %v1639_v44 = vadd.f32 %v3114_v49, %v1638_v41  ;;  %v2502_v46 = vpop.f32.mrb[57].mxu0  ;;  %v2570_v47 = vpop.f32.mrb[57].mxu1 }
 0x196   : > { %v1378_v50 = vpop.f32.mrb[58].mxu0  ;;  %v1641_v51 = vpop.f32.mrb[58].mxu1 }
 0x197   : > { %v2192_v0 = vpack.c.bf16 %v1783_v42, %v1782_v35  ;;  %v1471_v54 = vmax.f32 %v1376_v43, 0.0  ;;  %v1734_v55 = vmax.f32 %v1639_v44, 0.0  ;;  %v1379_v58 = vadd.f32 %v3114_v49, %v1378_v50  ;;  %v2503_v3 = vpop.f32.mrb[59].mxu0  ;;  %v2571_v60 = vpop.f32.mrb[59].mxu1 }
 0x198   : > { %v1642_v61 = vadd.f32 %v3114_v49, %v1641_v51 }
 0x199   : > { %2193 = vst [vmem:[%s3231_s28] sm:$0xff] %v2192_v0   ;;  %v1759_v63 = vmax.f32 %v1471_v54, %v1734_v55  ;;  %v1472_v1 = vmax.f32 %v1379_v58, 0.0 }
 0x19a   : > { %v1735_v2 = vmax.f32 %v1642_v61, 0.0 }
 0x19b   : > { %v1784_v4 = vmax.f32 %v3128_v18, %v1759_v63 }
 0x19c   : > { %v1760_v5 = vmax.f32 %v1472_v1, %v1735_v2  ;;  %v1383_v7 = vpop.f32.mrb[60].mxu0  ;;  %v1646_v8 = vpop.f32.mrb[60].mxu1 }
 0x19d   : > { %v1384_v9 = vadd.f32 %v3114_v49, %v1383_v7  ;;  %v1647_v12 = vadd.f32 %v3114_v49, %v1646_v8  ;;  %v2506_v13 = vpop.f32.mrb[61].mxu0  ;;  %v2574_v16 = vpop.f32.mrb[61].mxu1 }
 0x19e   : > { %v1785_v17 = vmax.f32 %v3130_v21, %v1760_v5  ;;  %v1386_v19 = vpop.f32.mrb[62].mxu0  ;;  %v1649_v22 = vpop.f32.mrb[62].mxu1 }
 0x19f   : > { %v1473_v23 = vmax.f32 %v1384_v9, 0.0  ;;  %v1736_v25 = vmax.f32 %v1647_v12, 0.0  ;;  %v1387_v26 = vadd.f32 %v3114_v49, %v1386_v19  ;;  %v1650_v18 = vadd.f32 %v3114_v49, %v1649_v22  ;;  %v2507_v27 = vpop.f32.mrb[63].mxu0  ;;  %v2575_v28 = vpop.f32.mrb[63].mxu1 }
 0x1a0   : > { %v2197_v29 = vpack.c.bf16 %v1785_v17, %v1784_v4 }
 0x1a1   : > { %v1761_v30 = vmax.f32 %v1473_v23, %v1736_v25  ;;  %v1474_v32 = vmax.f32 %v1387_v26, 0.0  ;;  %v1737_v35 = vmax.f32 %v1650_v18, 0.0 }
 0x1a2   : > { %2249 = vst [vmem:[%s3231_s28 + $0x8] sm:$0xff] %v2197_v29  }
 0x1a3   : > { %v1786_v37 = vmax.f32 %v3136_v36, %v1761_v30  ;;  %v1762_v40 = vmax.f32 %v1474_v32, %v1737_v35 }
 0x1a4   : > { %v1391_v41 = vpop.f32.mrb[64].mxu0  ;;  %v1654_v21 = vpop.f32.mrb[64].mxu1 }
 0x1a5   : > { %v1787_v42 = vmax.f32 %v3138_v39, %v1762_v40  ;;  %v1392_v43 = vadd.f32 %v3114_v49, %v1391_v41  ;;  %v1655_v44 = vadd.f32 %v3114_v49, %v1654_v21  ;;  %v2510_v46 = vpop.f32.mrb[65].mxu0  ;;  %v2578_v47 = vpop.f32.mrb[65].mxu1 }
 0x1a6   : > { %v1394_v50 = vpop.f32.mrb[66].mxu0  ;;  %v1657_v51 = vpop.f32.mrb[66].mxu1 }
 0x1a7   : > { %v2202_v0 = vpack.c.bf16 %v1787_v42, %v1786_v37  ;;  %v1475_v54 = vmax.f32 %v1392_v43, 0.0  ;;  %v1738_v55 = vmax.f32 %v1655_v44, 0.0  ;;  %v1395_v58 = vadd.f32 %v3114_v49, %v1394_v50  ;;  %v2511_v36 = vpop.f32.mrb[67].mxu0  ;;  %v2579_v3 = vpop.f32.mrb[67].mxu1 }
 0x1a8   : > { %v1658_v60 = vadd.f32 %v3114_v49, %v1657_v51 }
 0x1a9   : > { %2250 = vst [vmem:[%s3231_s28 + $0x10] sm:$0xff] %v2202_v0   ;;  %v1763_v61 = vmax.f32 %v1475_v54, %v1738_v55  ;;  %v1476_v39 = vmax.f32 %v1395_v58, 0.0 }
 0x1aa   : > { %v1739_v63 = vmax.f32 %v1658_v60, 0.0 }
 0x1ab   : > { %v1788_v1 = vmax.f32 %v3144_v56, %v1763_v61 }
 0x1ac   : > { %v1764_v2 = vmax.f32 %v1476_v39, %v1739_v63  ;;  %v1399_v4 = vpop.f32.mrb[68].mxu0  ;;  %v1662_v5 = vpop.f32.mrb[68].mxu1 }
 0x1ad   : > { %v1400_v7 = vadd.f32 %v3114_v49, %v1399_v4  ;;  %v1663_v8 = vadd.f32 %v3114_v49, %v1662_v5  ;;  %v2514_v9 = vpop.f32.mrb[69].mxu0  ;;  %v2582_v12 = vpop.f32.mrb[69].mxu1 }
 0x1ae   : > { %v1789_v13 = vmax.f32 %v3146_v53, %v1764_v2  ;;  %v1402_v16 = vpop.f32.mrb[70].mxu0  ;;  %v1665_v17 = vpop.f32.mrb[70].mxu1 }
 0x1af   : > { %v1477_v19 = vmax.f32 %v1400_v7, 0.0  ;;  %v1740_v22 = vmax.f32 %v1663_v8, 0.0  ;;  %v1403_v23 = vadd.f32 %v3114_v49, %v1402_v16  ;;  %v1666_v56 = vadd.f32 %v3114_v49, %v1665_v17  ;;  %v2515_v25 = vpop.f32.mrb[71].mxu0  ;;  %v2583_v26 = vpop.f32.mrb[71].mxu1 }
 0x1b0   : > { %v2207_v18 = vpack.c.bf16 %v1789_v13, %v1788_v1 }
 0x1b1   : > { %v1765_v27 = vmax.f32 %v1477_v19, %v1740_v22  ;;  %v1478_v28 = vmax.f32 %v1403_v23, 0.0  ;;  %v1741_v29 = vmax.f32 %v1666_v56, 0.0 }
 0x1b2   : > { %2251 = vst [vmem:[%s3231_s28 + $0x18] sm:$0xff] %v2207_v18  }
 0x1b3   : > { %v1790_v30 = vmax.f32 %v3152_v11, %v1765_v27  ;;  %v1766_v32 = vmax.f32 %v1478_v28, %v1741_v29 }
 0x1b4   : > { %v1407_v35 = vpop.f32.mrb[72].mxu0  ;;  %v1670_v53 = vpop.f32.mrb[72].mxu1 }
 0x1b5   : > { %v1791_v37 = vmax.f32 %v3154_v14, %v1766_v32  ;;  %v1408_v40 = vadd.f32 %v3114_v49, %v1407_v35  ;;  %v1671_v41 = vadd.f32 %v3114_v49, %v1670_v53  ;;  %v2518_v21 = vpop.f32.mrb[73].mxu0  ;;  %v2586_v42 = vpop.f32.mrb[73].mxu1 }
 0x1b6   : > { %v1410_v43 = vpop.f32.mrb[74].mxu0  ;;  %v1673_v44 = vpop.f32.mrb[74].mxu1 }
 0x1b7   : > { %v2212_v46 = vpack.c.bf16 %v1791_v37, %v1790_v30  ;;  %v1479_v47 = vmax.f32 %v1408_v40, 0.0  ;;  %v1742_v50 = vmax.f32 %v1671_v41, 0.0  ;;  %v1411_v51 = vadd.f32 %v3114_v49, %v1410_v43  ;;  %v2519_v11 = vpop.f32.mrb[75].mxu0  ;;  %v2587_v0 = vpop.f32.mrb[75].mxu1 }
 0x1b8   : > { %v1674_v54 = vadd.f32 %v3114_v49, %v1673_v44 }
 0x1b9   : > { %2252 = vst [vmem:[%s3231_s28 + $0x20] sm:$0xff] %v2212_v46   ;;  %v1767_v55 = vmax.f32 %v1479_v47, %v1742_v50  ;;  %v1480_v14 = vmax.f32 %v1411_v51, 0.0 }
 0x1ba   : > { %v1743_v58 = vmax.f32 %v1674_v54, 0.0 }
 0x1bb   : > { %v1792_v36 = vmax.f32 %v3160_v31, %v1767_v55 }
 0x1bc   : > { %v1768_v3 = vmax.f32 %v1480_v14, %v1743_v58  ;;  %v1415_v60 = vpop.f32.mrb[76].mxu0  ;;  %v1678_v61 = vpop.f32.mrb[76].mxu1 }
 0x1bd   : > { %v1416_v39 = vadd.f32 %v3114_v49, %v1415_v60  ;;  %v1679_v63 = vadd.f32 %v3114_v49, %v1678_v61  ;;  %v2522_v1 = vpop.f32.mrb[77].mxu0  ;;  %v2590_v2 = vpop.f32.mrb[77].mxu1 }
 0x1be   : > { %v1793_v4 = vmax.f32 %v3162_v34, %v1768_v3  ;;  %v1418_v5 = vpop.f32.mrb[78].mxu0  ;;  %v1681_v7 = vpop.f32.mrb[78].mxu1 }
 0x1bf   : > { %v1481_v8 = vmax.f32 %v1416_v39, 0.0  ;;  %v1744_v9 = vmax.f32 %v1679_v63, 0.0  ;;  %v1419_v12 = vadd.f32 %v3114_v49, %v1418_v5  ;;  %v1682_v31 = vadd.f32 %v3114_v49, %v1681_v7  ;;  %v2523_v13 = vpop.f32.mrb[79].mxu0  ;;  %v2591_v16 = vpop.f32.mrb[79].mxu1 }
 0x1c0   : > { %v2217_v17 = vpack.c.bf16 %v1793_v4, %v1792_v36 }
 0x1c1   : > { %v1769_v19 = vmax.f32 %v1481_v8, %v1744_v9  ;;  %v1482_v22 = vmax.f32 %v1419_v12, 0.0  ;;  %v1745_v23 = vmax.f32 %v1682_v31, 0.0 }
 0x1c2   : > { %2253 = vst [vmem:[%s3231_s28 + $0x28] sm:$0xff] %v2217_v17  }
 0x1c3   : > { %v1794_v56 = vmax.f32 %v3168_v52, %v1769_v19  ;;  %v1770_v25 = vmax.f32 %v1482_v22, %v1745_v23 }
 0x1c4   : > { %v1423_v26 = vpop.f32.mrb[80].mxu0  ;;  %v1686_v34 = vpop.f32.mrb[80].mxu1 }
 0x1c5   : > { %v1795_v18 = vmax.f32 %v3170_v57, %v1770_v25  ;;  %v1424_v27 = vadd.f32 %v3114_v49, %v1423_v26  ;;  %v1687_v28 = vadd.f32 %v3114_v49, %v1686_v34  ;;  %v2526_v29 = vpop.f32.mrb[81].mxu0  ;;  %v2594_v30 = vpop.f32.mrb[81].mxu1 }
 0x1c6   : > { %v1426_v32 = vpop.f32.mrb[82].mxu0  ;;  %v1689_v35 = vpop.f32.mrb[82].mxu1 }
 0x1c7   : > { %v2222_v53 = vpack.c.bf16 %v1795_v18, %v1794_v56  ;;  %v1483_v37 = vmax.f32 %v1424_v27, 0.0  ;;  %v1746_v40 = vmax.f32 %v1687_v28, 0.0  ;;  %v1427_v41 = vadd.f32 %v3114_v49, %v1426_v32  ;;  %v2527_v52 = vpop.f32.mrb[83].mxu0  ;;  %v2595_v21 = vpop.f32.mrb[83].mxu1 }
 0x1c8   : > { %v1690_v42 = vadd.f32 %v3114_v49, %v1689_v35 }
 0x1c9   : > { %2254 = vst [vmem:[%s3231_s28 + $0x30] sm:$0xff] %v2222_v53   ;;  %v1771_v43 = vmax.f32 %v1483_v37, %v1746_v40  ;;  %v1484_v57 = vmax.f32 %v1427_v41, 0.0 }
 0x1ca   : > { %v1747_v44 = vmax.f32 %v1690_v42, 0.0 }
 0x1cb   : > { %v1796_v46 = vmax.f32 %v3176_v10, %v1771_v43 }
 0x1cc   : > { %v1772_v47 = vmax.f32 %v1484_v57, %v1747_v44  ;;  %v1431_v50 = vpop.f32.mrb[84].mxu0  ;;  %v1694_v51 = vpop.f32.mrb[84].mxu1 }
 0x1cd   : > { %v1432_v11 = vadd.f32 %v3114_v49, %v1431_v50  ;;  %v1695_v0 = vadd.f32 %v3114_v49, %v1694_v51  ;;  %v2530_v54 = vpop.f32.mrb[85].mxu0  ;;  %v2598_v55 = vpop.f32.mrb[85].mxu1 }
 0x1ce   : > { %v1797_v14 = vmax.f32 %v3178_v15, %v1772_v47  ;;  %v1434_v58 = vpop.f32.mrb[86].mxu0  ;;  %v1697_v36 = vpop.f32.mrb[86].mxu1 }
 0x1cf   : > { %v1485_v3 = vmax.f32 %v1432_v11, 0.0  ;;  %v1748_v60 = vmax.f32 %v1695_v0, 0.0  ;;  %v1435_v61 = vadd.f32 %v3114_v49, %v1434_v58  ;;  %v1698_v10 = vadd.f32 %v3114_v49, %v1697_v36  ;;  %v2531_v39 = vpop.f32.mrb[87].mxu0  ;;  %v2599_v63 = vpop.f32.mrb[87].mxu1 }
 0x1d0   : > { %v2227_v1 = vpack.c.bf16 %v1797_v14, %v1796_v46 }
 0x1d1   : > { %v1773_v2 = vmax.f32 %v1485_v3, %v1748_v60  ;;  %v1486_v4 = vmax.f32 %v1435_v61, 0.0  ;;  %v1749_v5 = vmax.f32 %v1698_v10, 0.0 }
 0x1d2   : > { %2255 = vst [vmem:[%s3231_s28 + $0x38] sm:$0xff] %v2227_v1  }
 0x1d3   : > { %v1798_v7 = vmax.f32 %v3184_v33, %v1773_v2  ;;  %v1774_v8 = vmax.f32 %v1486_v4, %v1749_v5 }
 0x1d4   : > { %v1439_v9 = vpop.f32.mrb[88].mxu0  ;;  %v1702_v15 = vpop.f32.mrb[88].mxu1 }
 0x1d5   : > { %v1799_v12 = vmax.f32 %v3186_v38, %v1774_v8  ;;  %v1440_v31 = vadd.f32 %v3114_v49, %v1439_v9  ;;  %v1703_v13 = vadd.f32 %v3114_v49, %v1702_v15  ;;  %v2534_v16 = vpop.f32.mrb[89].mxu0  ;;  %v2602_v17 = vpop.f32.mrb[89].mxu1 }
 0x1d6   : > { %v1442_v19 = vpop.f32.mrb[90].mxu0  ;;  %v1705_v22 = vpop.f32.mrb[90].mxu1 }
 0x1d7   : > { %v2232_v23 = vpack.c.bf16 %v1799_v12, %v1798_v7  ;;  %v1487_v56 = vmax.f32 %v1440_v31, 0.0  ;;  %v1750_v25 = vmax.f32 %v1703_v13, 0.0  ;;  %v1443_v26 = vadd.f32 %v3114_v49, %v1442_v19  ;;  %v2535_v33 = vpop.f32.mrb[91].mxu0  ;;  %v2603_v34 = vpop.f32.mrb[91].mxu1 }
 0x1d8   : > { %v1706_v18 = vadd.f32 %v3114_v49, %v1705_v22 }
 0x1d9   : > { %2256 = vst [vmem:[%s3231_s28 + $0x40] sm:$0xff] %v2232_v23   ;;  %v1775_v27 = vmax.f32 %v1487_v56, %v1750_v25  ;;  %v1488_v38 = vmax.f32 %v1443_v26, 0.0 }
 0x1da   : > { %v1751_v28 = vmax.f32 %v1706_v18, 0.0 }
 0x1db   : > { %v1800_v29 = vmax.f32 %v3192_v59, %v1775_v27 }
 0x1dc   : > { %v1776_v30 = vmax.f32 %v1488_v38, %v1751_v28  ;;  %v1447_v32 = vpop.f32.mrb[92].mxu0  ;;  %v1710_v35 = vpop.f32.mrb[92].mxu1 }
 0x1dd   : > { %v1448_v53 = vadd.f32 %v3114_v49, %v1447_v32  ;;  %v1711_v37 = vadd.f32 %v3114_v49, %v1710_v35  ;;  %v2538_v40 = vpop.f32.mrb[93].mxu0  ;;  %v2606_v41 = vpop.f32.mrb[93].mxu1 }
 0x1de   : > { %v1801_v52 = vmax.f32 %v3194_v62, %v1776_v30  ;;  %v1450_v21 = vpop.f32.mrb[94].mxu0  ;;  %v1713_v42 = vpop.f32.mrb[94].mxu1 }
 0x1df   : > { %v1489_v43 = vmax.f32 %v1448_v53, 0.0  ;;  %v1752_v57 = vmax.f32 %v1711_v37, 0.0  ;;  %v1451_v44 = vadd.f32 %v3114_v49, %v1450_v21  ;;  %v1714_v59 = vadd.f32 %v3114_v49, %v1713_v42  ;;  %v2539_v46 = vpop.f32.mrb[95].mxu0  ;;  %v2607_v47 = vpop.f32.mrb[95].mxu1 }
 0x1e0   : > { %v2237_v50 = vpack.c.bf16 %v1801_v52, %v1800_v29 }
 0x1e1   : > { %v1777_v51 = vmax.f32 %v1489_v43, %v1752_v57  ;;  %v1490_v11 = vmax.f32 %v1451_v44, 0.0  ;;  %v1753_v0 = vmax.f32 %v1714_v59, 0.0 }
 0x1e2   : > { %2257 = vst [vmem:[%s3231_s28 + $0x48] sm:$0xff] %v2237_v50  }
 0x1e3   : > { %v1802_v54 = vmax.f32 %v3200_v20, %v1777_v51  ;;  %v1778_v55 = vmax.f32 %v1490_v11, %v1753_v0 }
 0x1e4   : > { %v1455_v14 = vpop.f32.mrb[96].mxu0  ;;  %v1718_v62 = vpop.f32.mrb[96].mxu1 }
 0x1e5   : > { %v1803_v58 = vmax.f32 %v3202_v24, %v1778_v55  ;;  %v1456_v36 = vadd.f32 %v3114_v49, %v1455_v14  ;;  %v1719_v3 = vadd.f32 %v3114_v49, %v1718_v62  ;;  %v2542_v60 = vpop.f32.mrb[97].mxu0  ;;  %v2610_v61 = vpop.f32.mrb[97].mxu1 }
 0x1e6   : > { %v1458_v10 = vpop.f32.mrb[98].mxu0  ;;  %v1721_v39 = vpop.f32.mrb[98].mxu1 }
 0x1e7   : > { %v2242_v63 = vpack.c.bf16 %v1803_v58, %v1802_v54  ;;  %v1491_v1 = vmax.f32 %v1456_v36, 0.0  ;;  %v1754_v2 = vmax.f32 %v1719_v3, 0.0  ;;  %v1459_v4 = vadd.f32 %v3114_v49, %v1458_v10  ;;  %v2543_v20 = vpop.f32.mrb[99].mxu0  ;;  %v2611_v5 = vpop.f32.mrb[99].mxu1 }
 0x1e8   : > { %v1722_v7 = vadd.f32 %v3114_v49, %v1721_v39 }
 0x1e9   : > { %2258 = vst [vmem:[%s3231_s28 + $0x50] sm:$0xff] %v2242_v63   ;;  %v1779_v8 = vmax.f32 %v1491_v1, %v1754_v2  ;;  %v1492_v24 = vmax.f32 %v1459_v4, 0.0 }
 0x1ea   : > { %v1755_v9 = vmax.f32 %v1722_v7, 0.0 }
 0x1eb   : > { %v1804_v15 = vmax.f32 %v3208_v45, %v1779_v8 }
 0x1ec   : > { %v1780_v12 = vmax.f32 %v1492_v24, %v1755_v9  ;;  %v1463_v31 = vpop.f32.mrb[100].mxu0  ;;  %v1726_v13 = vpop.f32.mrb[100].mxu1 }
 0x1ed   : > { %v1464_v16 = vadd.f32 %v3114_v49, %v1463_v31  ;;  %v1727_v17 = vadd.f32 %v3114_v49, %v1726_v13  ;;  %v2546_v19 = vpop.f32.mrb[101].mxu0  ;;  %v2614_v22 = vpop.f32.mrb[101].mxu1 }
 0x1ee   : > { %v1805_v23 = vmax.f32 %v3210_v48, %v1780_v12  ;;  %v1466_v56 = vpop.f32.mrb[102].mxu0  ;;  %v1729_v25 = vpop.f32.mrb[102].mxu1 }
 0x1ef   : > { %v1493_v26 = vmax.f32 %v1464_v16, 0.0  ;;  %v1756_v33 = vmax.f32 %v1727_v17, 0.0  ;;  %v2547_v34 = vpop.f32.mrb[103].mxu0  ;;  %v2615_v18 = vpop.f32.mrb[103].mxu1 }
 0x1f0   : > { %v2247_v45 = vpack.c.bf16 %v1805_v23, %v1804_v15 }
 0x1f1   : > { %v1781_v27 = vmax.f32 %v1493_v26, %v1756_v33 }
 0x1f2   : > { %2259 = vst [vmem:[%s3231_s28 + $0x58] sm:$0xff] %v2247_v45  }
 0x1f3   : > { %v1806_v38 = vmax.f32 %v3214_v6, %v1781_v27 }
 0x1f5   : > { %v2188_v28 = vpack.c.bf16 %v1806_v38, %v1806_v38 }
 0x1f7   : > { %1932 = vst [vmem:[%s3231_s28 + $0x60] sm:$0x3] %v2188_v28 }
 0x1f8 PF: > { %p10_p9 = scmp.ge.s32.totalorder %s2769_s16, 4   ;;  %s3327_s12 = smov %s2724_s13 }
 0x1f9   : > { %s3328_s13 = smov %s2778_s19  ;;  %s3329_s14 = smov %s2769_s16 }
 0x1fa   :  { %12 = sbr.rel (!%p10_p9) target bundleno = 2 (0x2), region = 111 }

// kernel: net_forward.4
= control target key start
LH: loop header
LB: loop body
LE: loop exit
PB: predicated region body
PF: predicated region fallthrough
CT: control target
= control target key end

     0   :  { %s1104_s12 = smov 0   ;;  %s1106_s13 = smov 0   ;;  %s1302_s0 = inlined_call_operand.vmem [shape: bf16[4,2,25,256], index: 0, kind: input, shape index: {}]   ;;  %s1303_s1 = inlined_call_operand.vmem [shape: bf16[256,128], index: 1, kind: input, shape index: {}]   ;;  %s1304_s2 = inlined_call_operand.vmem [shape: f32[1,128], index: 2, kind: input, shape index: {}]   ;;  %s1305_s3 = inlined_call_operand.vmem [shape: bf16[2,25,128], index: 3, kind: output, shape index: {}]  }
   0x1   :  { %s1108_s14 = smov 0  }
   0x2 LB: > { %s811_s15 = sadd.s32 4294967295, %s1082_s14   ;;  %s1121_s16 = sadd.s32 1, %s1082_s14   ;;  %s1082_s14 = sphi %s1108_s14, %s1308_s14   ;;  %s1078_s13 = sphi %s1106_s13, %s1307_s13   ;;  %s1074_s12 = sphi %s1104_s12, %s1306_s12  }
   0x3   : > { %s17_s17 = ssub.s32 %s1082_s14, %s1121_s16  ;;  %s20_s18 = sadd.s32 1, %s1078_s13 }
   0x4   : > { %p18_p0 = scmp.eq.s32.totalorder %s17_s17, 0  ;;  %p27_p1 = scmp.ne.s32.totalorder %s1078_s13, %s1074_s12 }
   0x5   : > { %p28_p2 = scmp.eq.s32.totalorder %s1082_s14, 0  ;;  %p814_p4 = scmp.ge.s32.totalorder %s1082_s14, 2 }
   0x6   : > { %s1130_s19 = scalar_select %p18_p0, %s1078_s13, %s20_s18  }
   0x7   : > { %p29_p3 = por %p28_p2, %p27_p1  ;;  %127 = sbr.rel (%p814_p4) target bundleno = 26 (0x1a), region = 24 }
   0xe   : > { %130 = sbr.rel (!%p29_p3) target bundleno = 26 (0x1a), region = 28  ;;  %s132_s20 = sand.u32 (%p29_p3), 1, %s1078_s13  }
   0xf   : > { %s873_s21 = sshll.u32 (%p29_p3), %s1082_s14, 5  ;;  %s815_s22 = sshll.u32 (%p29_p3), %s132_s20, 7 }
  0x10   : > { %s1138_s25 = scalar_lea.vmem (%p29_p3), %s1302_s0, %s873_s21  ;;  %s134_s26 = scalar_lea.vmem (%p29_p3), [#allocation2], %s815_s22 }
  0x11   : > { %v195_v0 = vld [vmem:[%s1138_s25] sm:$0xff] (%p29_p3)  ;;  %v197_v1 = vld [vmem:[%s1138_s25 + $0x8] sm:$0xff] (%p29_p3)  ;;  %v199_v2 = vld [vmem:[%s1138_s25 + $0x10] sm:$0xff] (%p29_p3) }
  0x12   : > { %196 = vst [vmem:[%s134_s26] sm:$0xff] (%p29_p3), %v195_v0  ;;  %198 = vst [vmem:[%s134_s26 + $0x8] sm:$0xff] (%p29_p3), %v197_v1  ;;  %v201_v3 = vld [vmem:[%s1138_s25 + $0x18] sm:$0xff] (%p29_p3)  ;;  %v203_v4 = vld [vmem:[%s1138_s25 + $0x40] sm:$0xff] (%p29_p3) }
  0x13   : > { %200 = vst [vmem:[%s134_s26 + $0x10] sm:$0xff] (%p29_p3), %v199_v2  ;;  %v205_v5 = vld [vmem:[%s1138_s25 + $0x48] sm:$0xff] (%p29_p3)  ;;  %202 = vst [vmem:[%s134_s26 + $0x18] sm:$0xff] (%p29_p3), %v201_v3  ;;  %v207_v6 = vld [vmem:[%s1138_s25 + $0x50] sm:$0xff] (%p29_p3) }
  0x14   : > { %204 = vst [vmem:[%s134_s26 + $0x20] sm:$0xff] (%p29_p3), %v203_v4  ;;  %206 = vst [vmem:[%s134_s26 + $0x28] sm:$0xff] (%p29_p3), %v205_v5  ;;  %v209_v7 = vld [vmem:[%s1138_s25 + $0x58] sm:$0xff] (%p29_p3)  ;;  %v211_v8 = vld [vmem:[%s1138_s25 + $0x80] sm:$0xff] (%p29_p3) }
  0x15   : > { %208 = vst [vmem:[%s134_s26 + $0x30] sm:$0xff] %v207_v6  ;;  %210 = vst [vmem:[%s134_s26 + $0x38] sm:$0xff] %v209_v7  ;;  %v213_v9 = vld [vmem:[%s1138_s25 + $0x88] sm:$0xff]  ;;  %v215_v10 = vld [vmem:[%s1138_s25 + $0x90] sm:$0xff] }
  0x16   : > { %212 = vst [vmem:[%s134_s26 + $0x40] sm:$0xff] %v211_v8  ;;  %v217_v11 = vld [vmem:[%s1138_s25 + $0x98] sm:$0xff]  ;;  %214 = vst [vmem:[%s134_s26 + $0x48] sm:$0xff] %v213_v9  ;;  %v219_v12 = vld [vmem:[%s1138_s25 + $0xc0] sm:$0xff] }
  0x17   : > { %216 = vst [vmem:[%s134_s26 + $0x50] sm:$0xff] %v215_v10  ;;  %218 = vst [vmem:[%s134_s26 + $0x58] sm:$0xff] %v217_v11  ;;  %v221_v13 = vld [vmem:[%s1138_s25 + $0xc8] sm:$0xff]  ;;  %v223_v14 = vld [vmem:[%s1138_s25 + $0xd0] sm:$0xff] }
  0x18   : > { %220 = vst [vmem:[%s134_s26 + $0x60] sm:$0xff] %v219_v12  ;;  %222 = vst [vmem:[%s134_s26 + $0x68] sm:$0xff] %v221_v13  ;;  %v225_v15 = vld [vmem:[%s1138_s25 + $0xd8] sm:$0xff] }
  0x19   : > { %224 = vst [vmem:[%s134_s26 + $0x70] sm:$0xff] %v223_v14  ;;  %226 = vst [vmem:[%s134_s26 + $0x78] sm:$0xff] %v225_v15 }
  0x1a PF: > { %p818_p5 = scmp.ge.s32.totalorder %s1082_s14, 1  ;;  %p231_p6 = scmp.lt.s32.totalorder %s1082_s14, 3 }
  0x1c   : > { %p232_p7 = pnand %p818_p5, %p231_p6 }
  0x1d   : > { %v1020_v16 = vld [vmem:[%s1303_s1 + $0x40] sm:$0xff] (!%p232_p7)   ;;  %v1022_v18 = vld [vmem:[%s1303_s1 + $0x48] sm:$0xff] (!%p232_p7)   ;;  %v1175_v20 = vld [vmem:[%s1303_s1 + $0x50] sm:$0xff] (!%p232_p7)   ;;  %s238_s20 = sand.u32 (!%p232_p7), 1, %s1074_s12   ;;  %p261_p8 = scmp.lt.s32.totalorder (!%p232_p7), %s811_s15, 1  ;;  %vm744_vm0 = vcmask (!%p232_p7), 1040384  }
  0x1e   : > { %235 = sbr.rel (%p232_p7) target bundleno = 332 (0x14c), region = 66  ;;  %v1021_v17 = vld [vmem:[%s1303_s1] sm:$0xff] (!%p232_p7)   ;;  %884 = vmatprep.subr.bf16.mxu0 (!%p232_p7), %v1020_v16  ;;  %912 = vmatprep.subr.bf16.mxu1 (!%p232_p7), %v1020_v16  ;;  %v1170_v19 = vld [vmem:[%s1303_s1 + $0x8] sm:$0xff] (!%p232_p7)   ;;  %v1182_v21 = vld [vmem:[%s1303_s1 + $0x10] sm:$0xff] (!%p232_p7)   ;;  %s819_s23 = sshll.u32 (!%p232_p7), %s238_s20, 7 }
  0x1f   : > { %885 = vmatpush3.bf16.msra.mxu0 (!%p232_p7), %v1021_v17  ;;  %913 = vmatpush3.bf16.msra.mxu1 (!%p232_p7), %v1021_v17  ;;  %v1189_v22 = vld [vmem:[%s1303_s1 + $0x58] sm:$0xff] (!%p232_p7)   ;;  %v1204_v24 = vld [vmem:[%s1303_s1 + $0x60] sm:$0xff] (!%p232_p7)   ;;  %v1030_v26 = vld [vmem:[%s1303_s1 + $0x68] sm:$0xff] (!%p232_p7)   ;;  %s1216_s29 = scalar_lea.vmem (!%p232_p7), [#allocation2], %s819_s23  ;;  %vm745_vm1 = vsmask.f32 (!%p232_p7), 256 }
  0x20   : > { %886 = vmatprep.subr.bf16.mxu0 (!%p232_p7), %v1022_v18  ;;  %914 = vmatprep.subr.bf16.mxu1 (!%p232_p7), %v1022_v18  ;;  %v1197_v23 = vld [vmem:[%s1303_s1 + $0x18] sm:$0xff] (!%p232_p7)   ;;  %v1029_v25 = vld [vmem:[%s1303_s1 + $0x20] sm:$0xff] (!%p232_p7)   ;;  %v1031_v29 = vld [vmem:[%s1303_s1 + $0x28] sm:$0xff] (!%p232_p7)  }
  0x21   : > { %v1038_v27 = vld [vmem:[%s1216_s29 + $0x4] ss:$8 sps:$4 sm:$0xff] (!%p232_p7)   ;;  %v1032_v30 = vld [vmem:[%s1303_s1 + $0x70] sm:$0xff] (!%p232_p7)   ;;  %v1034_v32 = vld [vmem:[%s1303_s1 + $0x78] sm:$0xff] (!%p232_p7)  }
  0x22   : > { %v1041_v28 = vld [vmem:[%s1216_s29 + $0x24] ss:$8 sps:$4 sm:$0xff] (!%p232_p7)   ;;  %458 = vmatprep.mubr.bf16.mxu0 (!%p232_p7), %v1038_v27  ;;  %v1033_v31 = vld [vmem:[%s1303_s1 + $0x30] sm:$0xff] (!%p232_p7)   ;;  %v1035_v33 = vld [vmem:[%s1303_s1 + $0x38] sm:$0xff] (!%p232_p7)  }
  0x23   : > { %887 = vmatpush3.bf16.msra.mxu0 (!%p232_p7), %v1170_v19  ;;  %915 = vmatpush3.bf16.msra.mxu1 (!%p232_p7), %v1170_v19  ;;  %v1036_v34 = vld [vmem:[%s1216_s29] ss:$8 sps:$4 sm:$0xff] (!%p232_p7)   ;;  %v1042_v36 = vld [vmem:[%s1216_s29 + $0x14] ss:$8 sps:$4 sm:$0x1f] (!%p232_p7)   ;;  %vm746_vm2 = vmand (!%p232_p7), %vm744_vm0, %vm745_vm1 }
  0x24   : > { %888 = vmatprep.subr.bf16.mxu0 (!%p232_p7), %v1175_v20  ;;  %916 = vmatprep.subr.bf16.mxu1 (!%p232_p7), %v1175_v20  ;;  %v1039_v35 = vld [vmem:[%s1216_s29 + $0x20] ss:$8 sps:$4 sm:$0xff] (!%p232_p7)   ;;  %v1044_v37 = vld [vmem:[%s1216_s29 + $0x34] ss:$8 sps:$4 sm:$0x1f] (!%p232_p7)  }
  0x25   : > { %536 = vmatprep.mubr.bf16.mxu1 %v1041_v28  ;;  %v1046_v38 = vld [vmem:[%s1216_s29 + $0x10] ss:$8 sps:$4 sm:$0x1f]   ;;  %v1050_v40 = vld [vmem:[%s1216_s29 + $0x44] ss:$8 sps:$4 sm:$0xff]   ;;  %s1310_s15 = smov (!%p261_p8, %s811_s15), 1 }
  0x26   : > { %v1047_v39 = vld [vmem:[%s1216_s29 + $0x30] ss:$8 sps:$4 sm:$0x1f]   ;;  %v1053_v41 = vld [vmem:[%s1216_s29 + $0x64] ss:$8 sps:$4 sm:$0xff]   ;;  %s874_s21 = sshll.u32 %s1310_s15, 4 }
  0x27   : > { %889 = vmatpush3.bf16.msra.mxu0 %v1182_v21  ;;  %917 = vmatpush3.bf16.msra.mxu1 %v1182_v21  ;;  %v1048_v42 = vld [vmem:[%s1216_s29 + $0x40] ss:$8 sps:$4 sm:$0xff]   ;;  %v1054_v44 = vld [vmem:[%s1216_s29 + $0x54] ss:$8 sps:$4 sm:$0x1f]   ;;  %s265_s23 = scalar_lea.vmem %s1305_s3, %s874_s21 }
  0x28   : > { %890 = vmatprep.subr.bf16.mxu0 %v1189_v22  ;;  %918 = vmatprep.subr.bf16.mxu1 %v1189_v22  ;;  %v1051_v43 = vld [vmem:[%s1216_s29 + $0x60] ss:$8 sps:$4 sm:$0xff]   ;;  %v1056_v45 = vld [vmem:[%s1216_s29 + $0x74] ss:$8 sps:$4 sm:$0x1f]  }
  0x29   : > { %v1058_v46 = vld [vmem:[%s1216_s29 + $0x50] ss:$8 sps:$4 sm:$0x1f]   ;;  %v1264_v50 = vld [vmem:[%s1304_s2] ss:$0 sm:$0xff] }
  0x2a   : > { %v1059_v47 = vld [vmem:[%s1216_s29 + $0x70] ss:$8 sps:$4 sm:$0x1f]  }
  0x2b   : > { %891 = vmatpush3.bf16.msra.mxu0 %v1197_v23  ;;  %919 = vmatpush3.bf16.msra.mxu1 %v1197_v23 }
  0x2c   : > { %892 = vmatprep.subr.bf16.mxu0 %v1204_v24  ;;  %920 = vmatprep.subr.bf16.mxu1 %v1204_v24 }
  0x2f   : > { %893 = vmatpush3.bf16.msra.mxu0 %v1029_v25  ;;  %921 = vmatpush3.bf16.msra.mxu1 %v1029_v25 }
  0x30   : > { %894 = vmatprep.subr.bf16.mxu0 %v1030_v26  ;;  %922 = vmatprep.subr.bf16.mxu1 %v1030_v26 }
  0x33   : > { %895 = vmatpush3.bf16.msra.mxu0 %v1031_v29  ;;  %923 = vmatpush3.bf16.msra.mxu1 %v1031_v29 }
  0x34   : > { %896 = vmatprep.subr.bf16.mxu0 %v1032_v30  ;;  %924 = vmatprep.subr.bf16.mxu1 %v1032_v30 }
  0x37   : > { %897 = vmatpush3.bf16.msra.mxu0 %v1033_v31  ;;  %925 = vmatpush3.bf16.msra.mxu1 %v1033_v31 }
  0x38   : > { %898 = vmatprep.subr.bf16.mxu0 %v1034_v32  ;;  %926 = vmatprep.subr.bf16.mxu1 %v1034_v32 }
  0x3b   : > { %899 = vmatpush3.bf16.msra.mxu0 %v1035_v33  ;;  %927 = vmatpush3.bf16.msra.mxu1 %v1035_v33 }
  0x3c   : > { %940 = vmatprep.subr.bf16.mxu0 %v1020_v16  ;;  %968 = vmatprep.subr.bf16.mxu1 %v1020_v16 }
  0x3e   : > { %459 = vmatmul.mubr.bf16.vlgmr.msra.gmra.mrb[0].mxu0 %v1036_v34  ;;  %537 = vmatmul.mubr.bf16.vlgmr.msra.gmra.mrb[0].mxu1 %v1039_v35 }
  0x3f   : > { %941 = vmatpush3.bf16.msra.mxu0 %v1021_v17  ;;  %969 = vmatpush3.bf16.msra.mxu1 %v1021_v17 }
  0x40   : > { %942 = vmatprep.subr.bf16.mxu0 %v1022_v18  ;;  %970 = vmatprep.subr.bf16.mxu1 %v1022_v18 }
  0x41   : > { %466 = vmatprep.mubr.bf16.mxu0 %v1042_v36  ;;  %544 = vmatprep.mubr.bf16.mxu1 %v1044_v37 }
  0x43   : > { %943 = vmatpush3.bf16.msra.mxu0 %v1170_v19  ;;  %971 = vmatpush3.bf16.msra.mxu1 %v1170_v19 }
  0x44   : > { %944 = vmatprep.subr.bf16.mxu0 %v1175_v20  ;;  %972 = vmatprep.subr.bf16.mxu1 %v1175_v20 }
  0x46   : > { %467 = vmatmul.mubr.bf16.gmra.mrb[4].mxu0 %v1046_v38  ;;  %545 = vmatmul.mubr.bf16.gmra.mrb[4].mxu1 %v1047_v39 }
  0x47   : > { %945 = vmatpush3.bf16.msra.mxu0 %v1182_v21  ;;  %973 = vmatpush3.bf16.msra.mxu1 %v1182_v21 }
  0x48   : > { %946 = vmatprep.subr.bf16.mxu0 %v1189_v22  ;;  %974 = vmatprep.subr.bf16.mxu1 %v1189_v22 }
  0x49   : > { %618 = vmatprep.mubr.bf16.mxu0 %v1050_v40  ;;  %696 = vmatprep.mubr.bf16.mxu1 %v1053_v41 }
  0x4b   : > { %947 = vmatpush3.bf16.msra.mxu0 %v1197_v23  ;;  %975 = vmatpush3.bf16.msra.mxu1 %v1197_v23 }
  0x4c   : > { %948 = vmatprep.subr.bf16.mxu0 %v1204_v24  ;;  %976 = vmatprep.subr.bf16.mxu1 %v1204_v24 }
  0x4f   : > { %949 = vmatpush3.bf16.msra.mxu0 %v1029_v25  ;;  %977 = vmatpush3.bf16.msra.mxu1 %v1029_v25 }
  0x50   : > { %950 = vmatprep.subr.bf16.mxu0 %v1030_v26  ;;  %978 = vmatprep.subr.bf16.mxu1 %v1030_v26 }
  0x53   : > { %951 = vmatpush3.bf16.msra.mxu0 %v1031_v29  ;;  %979 = vmatpush3.bf16.msra.mxu1 %v1031_v29 }
  0x54   : > { %952 = vmatprep.subr.bf16.mxu0 %v1032_v30  ;;  %980 = vmatprep.subr.bf16.mxu1 %v1032_v30 }
  0x57   : > { %953 = vmatpush3.bf16.msra.mxu0 %v1033_v31  ;;  %981 = vmatpush3.bf16.msra.mxu1 %v1033_v31 }
  0x58   : > { %954 = vmatprep.subr.bf16.mxu0 %v1034_v32  ;;  %982 = vmatprep.subr.bf16.mxu1 %v1034_v32 }
  0x5b   : > { %955 = vmatpush3.bf16.msra.mxu0 %v1035_v33  ;;  %983 = vmatpush3.bf16.msra.mxu1 %v1035_v33 }
  0x5e   : > { %619 = vmatmul.mubr.bf16.vlgmr.msra.gmra.mrb[8].mxu0 %v1048_v42  ;;  %697 = vmatmul.mubr.bf16.vlgmr.msra.gmra.mrb[8].mxu1 %v1051_v43 }
  0x5f   : > { %626 = vmatprep.mubr.bf16.mxu0 %v1054_v44  ;;  %704 = vmatprep.mubr.bf16.mxu1 %v1056_v45 }
  0x66   : > { %627 = vmatmul.mubr.bf16.gmra.mrb[12].mxu0 %v1058_v46  ;;  %705 = vmatmul.mubr.bf16.gmra.mrb[12].mxu1 %v1059_v47 }
 0x111   : > { %v900_v48 = vpop.f32.mrb[0].mxu0  ;;  %v928_v49 = vpop.f32.mrb[0].mxu1 }
 0x112   : > { %v901_v51 = vpop.f32.mrb[1].mxu0  ;;  %v929_v52 = vpop.f32.mrb[1].mxu1 }
 0x113   : > { %v902_v53 = vadd.f32 %v901_v51, %v900_v48  ;;  %v930_v54 = vadd.f32 %v929_v52, %v928_v49  ;;  %v903_v55 = vpop.f32.mrb[2].mxu0  ;;  %v931_v56 = vpop.f32.mrb[2].mxu1 }
 0x114   : > { %v904_v57 = vpop.f32.mrb[3].mxu0  ;;  %v932_v58 = vpop.f32.mrb[3].mxu1 }
 0x115   : > { %v461_v59 = vadd.f32 %v902_v53, %v1264_v50  ;;  %v539_v60 = vadd.f32 %v930_v54, %v1264_v50  ;;  %v905_v61 = vadd.f32 %v904_v57, %v903_v55  ;;  %v933_v62 = vadd.f32 %v932_v58, %v931_v56 }
 0x117   : > { %v475_v63 = vmax.f32 %v461_v59, 0.0  ;;  %v553_v0 = vmax.f32 %v539_v60, 0.0  ;;  %v464_v1 = vadd.f32 %v905_v61, %v1264_v50  ;;  %v542_v2 = vadd.f32 %v933_v62, %v1264_v50 }
 0x119   : > { %v1270_v3 = vmax.f32 %v475_v63, %v553_v0  ;;  %v476_v4 = vmax.f32 %v464_v1, 0.0  ;;  %v554_v5 = vmax.f32 %v542_v2, 0.0  ;;  %v906_v6 = vpop.f32.mrb[4].mxu0  ;;  %v934_v7 = vpop.f32.mrb[4].mxu1 }
 0x11a   : > { %v907_v8 = vpop.f32.mrb[5].mxu0  ;;  %v935_v9 = vpop.f32.mrb[5].mxu1 }
 0x11b   : > { %v558_v10 = vmax.f32 %v476_v4, %v554_v5  ;;  %v908_v11 = vadd.f32 %v907_v8, %v906_v6  ;;  %v936_v12 = vadd.f32 %v935_v9, %v934_v7  ;;  %v909_v13 = vpop.f32.mrb[6].mxu0  ;;  %v937_v14 = vpop.f32.mrb[6].mxu1 }
 0x11c   : > { %v910_v15 = vpop.f32.mrb[7].mxu0  ;;  %v938_v16 = vpop.f32.mrb[7].mxu1 }
 0x11d   : > { %v469_v17 = vadd.f32 %v908_v11, %v1264_v50  ;;  %v547_v18 = vadd.f32 %v936_v12, %v1264_v50  ;;  %v911_v19 = vadd.f32 %v910_v15, %v909_v13  ;;  %v939_v20 = vadd.f32 %v938_v16, %v937_v14  ;;  %v747_v16 = vld [vmem:[%s265_s23 + $0xc] sm:$0x1] }
 0x11f   : > { %v477_v21 = vmax.f32 %v469_v17, 0.0  ;;  %v555_v22 = vmax.f32 %v547_v18, 0.0  ;;  %v472_v23 = vadd.f32 %v911_v19, %v1264_v50  ;;  %v550_v24 = vadd.f32 %v939_v20, %v1264_v50 }
 0x121   : > { %v559_v25 = vmax.f32 %v477_v21, %v555_v22  ;;  %v478_v26 = vmax.f32 %v472_v23, 0.0  ;;  %v556_v27 = vmax.f32 %v550_v24, 0.0 }
 0x123   : > { %v560_v28 = vmax.f32 %v478_v26, %v556_v27 }
 0x131   : > { %v956_v29 = vpop.f32.mrb[8].mxu0  ;;  %v984_v30 = vpop.f32.mrb[8].mxu1 }
 0x132   : > { %v957_v31 = vpop.f32.mrb[9].mxu0  ;;  %v985_v32 = vpop.f32.mrb[9].mxu1 }
 0x133   : > { %v958_v33 = vadd.f32 %v957_v31, %v956_v29  ;;  %v986_v34 = vadd.f32 %v985_v32, %v984_v30  ;;  %v959_v35 = vpop.f32.mrb[10].mxu0  ;;  %v987_v36 = vpop.f32.mrb[10].mxu1 }
 0x134   : > { %v960_v37 = vpop.f32.mrb[11].mxu0  ;;  %v988_v38 = vpop.f32.mrb[11].mxu1 }
 0x135   : > { %v621_v39 = vadd.f32 %v958_v33, %v1264_v50  ;;  %v699_v40 = vadd.f32 %v986_v34, %v1264_v50  ;;  %v961_v41 = vadd.f32 %v960_v37, %v959_v35  ;;  %v989_v42 = vadd.f32 %v988_v38, %v987_v36 }
 0x137   : > { %v635_v43 = vmax.f32 %v621_v39, 0.0  ;;  %v713_v44 = vmax.f32 %v699_v40, 0.0  ;;  %v624_v45 = vadd.f32 %v961_v41, %v1264_v50  ;;  %v702_v46 = vadd.f32 %v989_v42, %v1264_v50 }
 0x139   : > { %v717_v47 = vmax.f32 %v635_v43, %v713_v44  ;;  %v636_v48 = vmax.f32 %v624_v45, 0.0  ;;  %v714_v49 = vmax.f32 %v702_v46, 0.0  ;;  %v962_v51 = vpop.f32.mrb[12].mxu0  ;;  %v990_v52 = vpop.f32.mrb[12].mxu1 }
 0x13a   : > { %v963_v53 = vpop.f32.mrb[13].mxu0  ;;  %v991_v54 = vpop.f32.mrb[13].mxu1 }
 0x13b   : > { %v721_v55 = vmax.f32 %v1270_v3, %v717_v47  ;;  %v718_v56 = vmax.f32 %v636_v48, %v714_v49  ;;  %v964_v57 = vadd.f32 %v963_v53, %v962_v51  ;;  %v992_v58 = vadd.f32 %v991_v54, %v990_v52  ;;  %v965_v59 = vpop.f32.mrb[14].mxu0  ;;  %v993_v60 = vpop.f32.mrb[14].mxu1 }
 0x13c   : > { %v966_v61 = vpop.f32.mrb[15].mxu0  ;;  %v994_v62 = vpop.f32.mrb[15].mxu1 }
 0x13d   : > { %v722_v63 = vmax.f32 %v558_v10, %v718_v56  ;;  %v629_v0 = vadd.f32 %v964_v57, %v1264_v50  ;;  %v707_v1 = vadd.f32 %v992_v58, %v1264_v50  ;;  %v967_v2 = vadd.f32 %v966_v61, %v965_v59 }
 0x13e   : > { %v995_v4 = vadd.f32 %v994_v62, %v993_v60 }
 0x13f   : > { %v882_v3 = vpack.c.bf16 %v722_v63, %v721_v55  ;;  %v637_v5 = vmax.f32 %v629_v0, 0.0  ;;  %v715_v6 = vmax.f32 %v707_v1, 0.0  ;;  %v632_v7 = vadd.f32 %v967_v2, %v1264_v50 }
 0x140   : > { %v710_v8 = vadd.f32 %v995_v4, %v1264_v50 }
 0x141   : > { %883 = vst [vmem:[%s265_s23] sm:$0xff] %v882_v3   ;;  %v719_v9 = vmax.f32 %v637_v5, %v715_v6  ;;  %v638_v10 = vmax.f32 %v632_v7, 0.0 }
 0x142   : > { %v716_v11 = vmax.f32 %v710_v8, 0.0 }
 0x143   : > { %v723_v12 = vmax.f32 %v559_v25, %v719_v9 }
 0x144   : > { %v720_v13 = vmax.f32 %v638_v10, %v716_v11 }
 0x145   : > { %v877_v14 = vpack.c.bf16 %v723_v12, %v723_v12 }
 0x146   : > { %v724_v15 = vmax.f32 %v560_v28, %v720_v13 }
 0x147   : > { %743 = vst [vmem:[%s265_s23 + $0x8] sm:$0xf] %v877_v14 }
 0x148   : > { %v878_v17 = vpack.c.bf16 %v724_v15, %v724_v15 }
 0x14a   : > { %v748_v18 = vsel %vm746_vm2, %v878_v17, %v747_v16 }
 0x14b   : > { %749 = vst [vmem:[%s265_s23 + $0xc] sm:$0x1] %v748_v18 }
 0x14c PF: > { %p10_p9 = scmp.ge.s32.totalorder %s1121_s16, 4   ;;  %s1306_s12 = smov %s1078_s13 }
 0x14d   : > { %s1307_s13 = smov %s1130_s19  ;;  %s1308_s14 = smov %s1121_s16 }
 0x14e   :  { %12 = sbr.rel (!%p10_p9) target bundleno = 2 (0x2), region = 108 }

// kernel: net_forward.5
= control target key start
LH: loop header
LB: loop body
LE: loop exit
PB: predicated region body
PF: predicated region fallthrough
CT: control target
= control target key end

     0   :  { %v785_v1 = vmov 0   ;;  %v98_v20 = vlaneseq  ;;  %v786_v25 = vmov 1966171168   ;;  %vm264_vm0 = vcmask 130048   ;;  %s1004_s0 = inlined_call_operand.vmem [shape: bf16[2,400], index: 0, kind: input, shape index: {}]   ;;  %s1005_s1 = inlined_call_operand.vmem [shape: bf16[400,128], index: 1, kind: input, shape index: {}]   ;;  %s1006_s2 = inlined_call_operand.vmem [shape: f32[1,128], index: 2, kind: input, shape index: {}]   ;;  %s1007_s3 = inlined_call_operand.vmem [shape: bf16[128,128], index: 3, kind: input, shape index: {}]   ;;  %s1008_s4 = inlined_call_operand.vmem [shape: f32[1,128], index: 4, kind: input, shape index: {}]   ;;  %s1009_s5 = inlined_call_operand.vmem [shape: bf16[128,128], index: 5, kind: input, shape index: {}]   ;;  %s1010_s6 = inlined_call_operand.vmem [shape: f32[1,128], index: 6, kind: input, shape index: {}]   ;;  %s1011_s7 = inlined_call_operand.hbm [shape: f32[2,128], index: 7, kind: output, shape index: {}]  }
   0x1   :  { %v720_v0 = vld [vmem:[%s1005_s1 + $0x40] sm:$0xff]   ;;  %308 = vmatprep.subr.bf16.mxu1 %v785_v1  ;;  %v723_v4 = vld [vmem:[%s1005_s1 + $0x48] sm:$0xff]   ;;  %v726_v7 = vld [vmem:[%s1005_s1 + $0x50] sm:$0xff]   ;;  %v96_v26 = vunpack.c.l.s4 %v786_v25  ;;  %v787_v38 = vmov 0.0  }
   0x2   :  { %v721_v2 = vld [vmem:[%s1005_s1 + $0x80] sm:$0xff]   ;;  %635 = vmatprep.subr.bf16.mxu0 %v720_v0  ;;  %v724_v5 = vld [vmem:[%s1005_s1 + $0x88] sm:$0xff]   ;;  %v727_v8 = vld [vmem:[%s1005_s1 + $0x90] sm:$0xff]   ;;  %v99_v27 = vshrl.u32 %v98_v20, 7 }
   0x3   :  { %v722_v3 = vld [vmem:[%s1005_s1] sm:$0xff]   ;;  %309 = vmatpush1.bf16.msra.mxu1 %v721_v2  ;;  %v725_v6 = vld [vmem:[%s1005_s1 + $0x8] sm:$0xff]   ;;  %v728_v9 = vld [vmem:[%s1005_s1 + $0x10] sm:$0xff]   ;;  %v97_v30 = vunpack.c.0.s8 %v96_v26 }
   0x4   :  { %636 = vmatpush3.bf16.msra.mxu0 %v722_v3  ;;  %310 = vmatprep.subr.bf16.mxu1 %v785_v1  ;;  %v729_v10 = vld [vmem:[%s1005_s1 + $0x58] sm:$0xff]   ;;  %v732_v13 = vld [vmem:[%s1005_s1 + $0x60] sm:$0xff]   ;;  %v735_v16 = vld [vmem:[%s1005_s1 + $0x68] sm:$0xff]  }
   0x5   :  { %637 = vmatprep.subr.bf16.mxu0 %v723_v4  ;;  %v730_v11 = vld [vmem:[%s1005_s1 + $0x98] sm:$0xff]   ;;  %v733_v14 = vld [vmem:[%s1005_s1 + $0xa0] sm:$0xff]   ;;  %v736_v17 = vld [vmem:[%s1005_s1 + $0xa8] sm:$0xff]   ;;  %v100_v32 = vsub.s32 %v97_v30, %v99_v27 }
   0x6   :  { %v731_v12 = vld [vmem:[%s1005_s1 + $0x18] sm:$0xff]   ;;  %v734_v15 = vld [vmem:[%s1005_s1 + $0x20] sm:$0xff]   ;;  %v737_v18 = vld [vmem:[%s1005_s1 + $0x28] sm:$0xff]  }
   0x7   :  { %311 = vmatpush1.bf16.msra.mxu1 %v724_v5  ;;  %v738_v19 = vld [vmem:[%s1005_s1 + $0x70] sm:$0xff]   ;;  %v590_v23 = vld.sshfl [vmem:[%s1004_s0] sm:$0x33 pattern:$0x75316420]  ;;  %v741_v24 = vld [vmem:[%s1005_s1 + $0x78] sm:$0xff]  }
   0x8   :  { %638 = vmatpush3.bf16.msra.mxu0 %v725_v6  ;;  %312 = vmatprep.subr.bf16.mxu1 %v785_v1  ;;  %v739_v21 = vld [vmem:[%s1005_s1 + $0xb0] sm:$0xff]   ;;  %v742_v28 = vld [vmem:[%s1005_s1 + $0xb8] sm:$0xff]   ;;  %v94_v29 = vcombine.high %v590_v23, %v590_v23  ;;  %v744_v33 = vld [vmem:[%s1005_s1 + $0xc0] sm:$0xff]   ;;  %v101_v36 = vrot.slane %v590_v23, %v100_v32 }
   0x9   :  { %639 = vmatprep.subr.bf16.mxu0 %v726_v7  ;;  %v740_v22 = vld [vmem:[%s1005_s1 + $0x30] sm:$0xff]   ;;  %v743_v31 = vld [vmem:[%s1005_s1 + $0x38] sm:$0xff]   ;;  %v745_v34 = vld [vmem:[%s1007_s3] sm:$0xff]  }
   0xa   :  { %v108_v35 = vrot.slane %v94_v29, %v100_v32  ;;  %v109_v39 = vcombine.high %v101_v36, %v101_v36  ;;  %v746_v40 = vld [vmem:[%s1007_s3 + $0x8] sm:$0xff]  }
   0xb   :  { %313 = vmatpush1.bf16.msra.mxu1 %v727_v8 }
   0xc   :  { %640 = vmatpush3.bf16.msra.mxu0 %v728_v9  ;;  %314 = vmatprep.subr.bf16.mxu1 %v785_v1  ;;  %v110_v37 = vcombine.high %v108_v35, %v108_v35 }
   0xd   :  { %641 = vmatprep.subr.bf16.mxu0 %v729_v10  ;;  %300 = vmatprep.mubr.bf16.mxu0 %v108_v35 }
   0xe   :  { %616 = vmatprep.mubr.msk.bf16.mxu1 %vm264_vm0, %v110_v37 }
   0xf   :  { %315 = vmatpush1.bf16.msra.mxu1 %v730_v11 }
  0x10   :  { %642 = vmatpush3.bf16.msra.mxu0 %v731_v12  ;;  %316 = vmatprep.subr.bf16.mxu1 %v785_v1 }
  0x11   :  { %643 = vmatprep.subr.bf16.mxu0 %v732_v13 }
  0x13   :  { %317 = vmatpush1.bf16.msra.mxu1 %v733_v14 }
  0x14   :  { %644 = vmatpush3.bf16.msra.mxu0 %v734_v15  ;;  %318 = vmatprep.subr.bf16.mxu1 %v785_v1 }
  0x15   :  { %645 = vmatprep.subr.bf16.mxu0 %v735_v16 }
  0x17   :  { %319 = vmatpush1.bf16.msra.mxu1 %v736_v17 }
  0x18   :  { %646 = vmatpush3.bf16.msra.mxu0 %v737_v18  ;;  %320 = vmatprep.subr.bf16.mxu1 %v785_v1 }
  0x19   :  { %647 = vmatprep.subr.bf16.mxu0 %v738_v19 }
  0x1b   :  { %321 = vmatpush1.bf16.msra.mxu1 %v739_v21 }
  0x1c   :  { %648 = vmatpush3.bf16.msra.mxu0 %v740_v22  ;;  %322 = vmatprep.subr.bf16.mxu1 %v785_v1 }
  0x1d   :  { %649 = vmatprep.subr.bf16.mxu0 %v741_v24 }
  0x1f   :  { %323 = vmatpush1.bf16.msra.mxu1 %v742_v28 }
  0x20   :  { %650 = vmatpush3.bf16.msra.mxu0 %v743_v31  ;;  %324 = vmatprep.subr.bf16.mxu1 %v785_v1 }
  0x21   :  { %675 = vmatprep.subr.bf16.mxu0 %v787_v38 }
  0x23   :  { %301 = vmatmul.mubr.bf16.vlgmr.msra.gmra.mrb[0].mxu0 %v101_v36  ;;  %325 = vmatpush1.bf16.msra.mxu1 %v744_v33 }
  0x24   :  { %676 = vmatpush3.bf16.msra.mxu0 %v745_v34  ;;  %695 = vmatprep.subr.bf16.mxu1 %v787_v38 }
  0x25   :  { %677 = vmatprep.subr.bf16.mxu0 %v787_v38 }
  0x26   :  { %341 = vmatmul.mubr.bf16.vlgmr.msra.gmra.mrb[0].mxu1 %v109_v39 }
  0x27   :  { %12 = vsyncpa [#allocation3], 0  ;;  %v747_v41 = vld [vmem:[%s1007_s3 + $0x10] sm:$0xff]   ;;  %v748_v42 = vld [vmem:[%s1007_s3 + $0x18] sm:$0xff]   ;;  %vm788_vm1 = vmmov 0   ;;  %s789_s16 = smov [#allocation2]  }
  0x28   :  { %678 = vmatpush3.bf16.msra.mxu0 %v746_v40  ;;  %v749_v43 = vld [vmem:[%s1007_s3 + $0x20] sm:$0xff]   ;;  %v750_v44 = vld [vmem:[%s1007_s3 + $0x28] sm:$0xff]   ;;  %v751_v45 = vld [vmem:[%s1007_s3 + $0x30] sm:$0xff]   ;;  %691 = vmatprep.mubr.msk.bf16.mxu0 %vm788_vm1, %v787_v38  ;;  %s581_s17 = sshll.u32 %s789_s16, 4  ;;  %s582_s17 = int_to_ptr.vmem [resolvable:$true] %s581_s17 }
  0x29   :  { %679 = vmatprep.subr.bf16.mxu0 %v787_v38  ;;  %v752_v46 = vld [vmem:[%s1007_s3 + $0x38] sm:$0xff]   ;;  %711 = vmatprep.mubr.msk.bf16.mxu1 %vm788_vm1, %v787_v38  ;;  %v753_v47 = vld [vmem:[%s1009_s5] sm:$0xff]   ;;  %v754_v48 = vld [vmem:[%s1009_s5 + $0x8] sm:$0xff]   ;;  %p766_p1 = scmp.lt.s32.totalorder %s582_s17, %s582_s17 }
  0x2a   :  { %696 = vmatpush3.bf16.msra.mxu1 %v753_v47  ;;  %v755_v49 = vld [vmem:[%s1009_s5 + $0x10] sm:$0xff]   ;;  %v756_v50 = vld [vmem:[%s1009_s5 + $0x18] sm:$0xff]   ;;  %v757_v51 = vld [vmem:[%s1009_s5 + $0x20] sm:$0xff]  }
  0x2b   :  { %697 = vmatprep.subr.bf16.mxu1 %v787_v38  ;;  %v758_v52 = vld [vmem:[%s1009_s5 + $0x28] sm:$0xff]   ;;  %v589_v55 = vld [vmem:[%s1006_s2] ss:$0 sm:$0xff]  ;;  %v759_v3 = vld [vmem:[%s1009_s5 + $0x30] sm:$0xff]  }
  0x2c   :  { %680 = vmatpush3.bf16.msra.mxu0 %v747_v41  ;;  %v760_v4 = vld [vmem:[%s1009_s5 + $0x38] sm:$0xff]   ;;  %v617_v5 = vld [vmem:[%s1008_s4] ss:$0 sm:$0xff]  ;;  %s761_s4 = scalar_lea.vmem %s582_s17, 32 }
  0x2d   :  { %681 = vmatprep.subr.bf16.mxu0 %v787_v38  ;;  %v626_v13 = vld [vmem:[%s1010_s6] ss:$0 sm:$0xff]  ;;  %p762_p0 = scmp.ne.s32.totalorder %s582_s17, %s761_s4  ;;  %p767_p2 = scmp.lt.s32.totalorder %s761_s4, %s761_s4 }
  0x2e   :  { %698 = vmatpush3.bf16.msra.mxu1 %v754_v48 }
  0x2f   :  { %699 = vmatprep.subr.bf16.mxu1 %v787_v38  ;;  %p768_p3 = por %p767_p2, %p766_p1 }
  0x30   :  { %682 = vmatpush3.bf16.msra.mxu0 %v748_v42 }
  0x31   :  { %683 = vmatprep.subr.bf16.mxu0 %v787_v38  ;;  %p769_p4 = pnand %p768_p3, %p762_p0 }
  0x32   :  { %700 = vmatpush3.bf16.msra.mxu1 %v755_v49 }
  0x33   :  { %701 = vmatprep.subr.bf16.mxu1 %v787_v38 }
  0x34   :  { %684 = vmatpush3.bf16.msra.mxu0 %v749_v43 }
  0x35   :  { %685 = vmatprep.subr.bf16.mxu0 %v787_v38 }
  0x36   :  { %702 = vmatpush3.bf16.msra.mxu1 %v756_v50 }
  0x37   :  { %703 = vmatprep.subr.bf16.mxu1 %v787_v38 }
  0x38   :  { %686 = vmatpush3.bf16.msra.mxu0 %v750_v44 }
  0x39   :  { %687 = vmatprep.subr.bf16.mxu0 %v787_v38 }
  0x3a   :  { %704 = vmatpush3.bf16.msra.mxu1 %v757_v51 }
  0x3b   :  { %705 = vmatprep.subr.bf16.mxu1 %v787_v38 }
  0x3c   :  { %688 = vmatpush3.bf16.msra.mxu0 %v751_v45 }
  0x3d   :  { %689 = vmatprep.subr.bf16.mxu0 %v787_v38 }
  0x3e   :  { %706 = vmatpush3.bf16.msra.mxu1 %v758_v52 }
  0x3f   :  { %707 = vmatprep.subr.bf16.mxu1 %v787_v38 }
  0x40   :  { %690 = vmatpush3.bf16.msra.mxu0 %v752_v46 }
  0x42   :  { %708 = vmatpush3.bf16.msra.mxu1 %v759_v3 }
  0x43   :  { %709 = vmatprep.subr.bf16.mxu1 %v787_v38 }
  0x46   :  { %710 = vmatpush3.bf16.msra.mxu1 %v760_v4 }
  0xf6   :  { %v651_v53 = vpop.f32.mrb[0].mxu0 }
  0xf7   :  { %v652_v54 = vpop.f32.mrb[1].mxu0 }
  0xf8   :  { %v653_v56 = vadd.f32 %v652_v54, %v651_v53  ;;  %v654_v57 = vpop.f32.mrb[2].mxu0 }
  0xf9   :  { %v655_v58 = vpop.f32.mrb[3].mxu0  ;;  %v342_v59 = vpop.f32.mrb[0].mxu1 }
  0xfa   :  { %v303_v60 = vadd.f32 %v653_v56, %v589_v55  ;;  %v344_v61 = vpop.f32.mrb[1].mxu1 }
  0xfb   :  { %v345_v62 = vpop.f32.mrb[2].mxu1 }
  0xfc   :  { %v343_v63 = vadd.f32 %v342_v59, %v303_v60  ;;  %v346_v0 = vpop.f32.mrb[3].mxu1 }
  0xfe   :  { %v348_v1 = vmax.f32 %v343_v63, 0.0 }
 0x100   :  { %v349_v2 = vpack.c.bf16 %v348_v1, %v348_v1 }
 0x102   :  { %692 = vmatmul.mubr.bf16.vlgmr.msra.gmra.mrb[4].mxu0 %v349_v2 }
 0x1d5   :  { %v455_v6 = vpop.f32.mrb[4].mxu0 }
 0x1d6   :  { %v456_v7 = vadd.f32 %v617_v5, %v455_v6  ;;  %v693_v8 = vpop.f32.mrb[5].mxu0 }
 0x1d7   :  { %v458_v9 = vpop.f32.mrb[6].mxu0 }
 0x1d8   :  { %v461_v10 = vmax.f32 %v456_v7, 0.0  ;;  %v694_v11 = vpop.f32.mrb[7].mxu0 }
 0x1da   :  { %v462_v12 = vpack.c.bf16 %v461_v10, %v461_v10 }
 0x1dc   :  { %712 = vmatmul.mubr.bf16.vlgmr.msra.gmra.mrb[4].mxu1 %v462_v12 }
 0x2af   :  { %v568_v14 = vpop.f32.mrb[4].mxu1 }
 0x2b0   :  { %v569_v15 = vadd.f32 %v626_v13, %v568_v14  ;;  %v713_v16 = vpop.f32.mrb[5].mxu1 }
 0x2b1   :  { %v571_v17 = vpop.f32.mrb[6].mxu1 }
 0x2b2   :  { %574 = vst [vmem:[#allocation2] sm:$0x3] %v569_v15  ;;  %v714_v18 = vpop.f32.mrb[7].mxu1 }
 0x2b3   :  { %772 = shalt.err (!%p769_p4)
}
 0x2b4   :  { %s773_s6 = scalar_lea.hbm %s1011_s7, 32 }
 0x2b5   :  { %p774_p5 = scmp.ne.s32.totalorder %s1011_s7, %s773_s6  ;;  %p777_p6 = scmp.lt.u32.totalorder %s773_s6, %s1011_s7 }
 0x2b7   :  { %p779_p7 = pnand %p777_p6, %p774_p5 }
 0x2b9   :  { %782 = shalt.err (!%p779_p7)
}
 0x2ba   :  { %584 = dma.vmem_to_hbm [thread:$0]  %s582_s17, 32, %s1011_s7, [#allocation3]  }
 0x2bb   :  { %783 = dma.done.wait [#allocation3], 32  }
 0x2bc   :  { %784 = vsyncadd [#allocation3], 4294967264 }
 0x2bd   :  { %588 = vsyncpa [#allocation3], 1 }

</bundles_post_ra>
